<compile_context>
chip_gen: v6e
topology: v6e:2x2x1
jax: 0.10.0
libtpu: 0.0.40
codegen_flags: <defaults>
</compile_context>

<pallas_src>
import functools

import numpy as np
import jax
import jax.numpy as jnp
from jax import lax
from jax.experimental import pallas as pl
from jax.experimental.pallas import tpu as pltpu

# ---------------- config (small, consistent with the module) ----------------
DIM = 8          # channels C
NUM_HEADS = 4
T = 4            # temporal window
T_SP = 4         # T_sp == T  -> single-table relative-bias path
SR_RATIO = 1
BN_EPS = 1e-5


# ----------------------------- Pallas kernels -------------------------------
def _attn_proj_kernel(x_ref, wcat_ref, bcat_ref, wproj_ref, bproj_ref,
                      bias_ref, zp_ref, sum_ref, sq_ref,
                      *, nh, t_len, groups, scale):
    """Fused q/kv projection + temporal diff + attention + 1x1 proj + BN sums.

    x_ref    : (G*T, C, N) VMEM  input frames, per-frame slab is (C, N)
    wcat_ref : (3*nh, C)   VMEM  [W_q; W_k; W_v] stacked
    bcat_ref : (3*nh, 1)   VMEM  [b_q; b_k; b_v]
    wproj_ref: (C, nh)     VMEM  1x1 conv weight
    bproj_ref: (C, 1)      VMEM  1x1 conv bias
    bias_ref : (T, T, nh,1)VMEM  relative position bias, bias_ref[t,s] -> (nh,1)
    zp_ref   : (G*T, C, N) VMEM  pre-BatchNorm output
    sum_ref  : (1, C, 1)   VMEM  per-block per-channel sum of zp
    sq_ref   : (1, C, 1)   VMEM  per-block per-channel sum of zp^2
    """
    C = x_ref.shape[1]
    w_cat = wcat_ref[...]            # (3nh, C)
    b_cat = bcat_ref[...]            # (3nh, 1)
    w_proj = wproj_ref[...]          # (C, nh)
    b_proj = bproj_ref[...]          # (C, 1)

    acc_sum = jnp.zeros((C, 1), jnp.float32)
    acc_sq = jnp.zeros((C, 1), jnp.float32)

    for g in range(groups):
        base = g * t_len
        # ---- fused q/k/v projection on the MXU: (3nh,C) @ (C,N) per frame ----
        # (adding the bias before the temporal diff is mathematically identical
        #  to the module's Linear-after-diff: 2(Wz_t+b)-(Wz_{t+1}+b) = W(2z_t-z_{t+1})+b)
        proj = [jnp.dot(w_cat, x_ref[base + t],
                        preferred_element_type=jnp.float32) + b_cat
                for t in range(t_len)]
        q = [p[0:nh] for p in proj]                 # (nh, N) each
        k = [p[nh:2 * nh] for p in proj]
        v = [p[2 * nh:3 * nh] for p in proj]
        # temporal-difference enhancement on q: 2*q_t - q_{t+1}, last frame kept
        qd = [2.0 * q[t] - q[t + 1] for t in range(t_len - 1)] + [q[t_len - 1]]

        for t in range(t_len):
            # ---- attention logits: contract spatial axis with a lane reduce
            # (XLU slot) on full (nh, N) slabs -> (nh, 1) columns per key frame.
            cols = []
            for s in range(t_len):
                logit = jnp.sum(qd[t] * k[s], axis=1, keepdims=True)   # (nh,1)
                cols.append(logit * scale + bias_ref[t, s])
            # ---- exact softmax over the T key frames (per head) ----
            m = cols[0]
            for s in range(1, t_len):
                m = jnp.maximum(m, cols[s])
            e = [jnp.exp(c - m) for c in cols]
            denom = e[0]
            for s in range(1, t_len):
                denom = denom + e[s]
            inv = 1.0 / denom                        # exact (no approx recip)
            # ---- attn @ v: broadcast (nh,1) prob columns over (nh,N) slabs ----
            out_t = (e[0] * inv) * v[0]
            for s in range(1, t_len):
                out_t = out_t + (e[s] * inv) * v[s]                    # (nh, N)
            # ---- 1x1 conv proj (nh -> C) on the MXU ----
            zp_t = jnp.dot(w_proj, out_t,
                           preferred_element_type=jnp.float32) + b_proj  # (C,N)
            zp_ref[base + t] = zp_t
            # ---- BatchNorm partial statistics (per channel) ----
            acc_sum = acc_sum + jnp.sum(zp_t, axis=1, keepdims=True)
            acc_sq = acc_sq + jnp.sum(zp_t * zp_t, axis=1, keepdims=True)

    sum_ref[0] = acc_sum
    sq_ref[0] = acc_sq


def _bn_residual_kernel(zp_ref, x_ref, scale_ref, shift_ref, o_ref):
    """out = x + zp * scale_c + shift_c (BatchNorm affine folded per channel)."""
    s = scale_ref[...]               # (C, 1)
    b = shift_ref[...]               # (C, 1)
    for i in range(zp_ref.shape[0]):
        o_ref[i] = x_ref[i] + zp_ref[i] * s + b


# ----------------------------- kernel wrappers -------------------------------
def _full_spec(a):
    nd = a.ndim
    return pl.BlockSpec(a.shape, lambda b, nd=nd: (0,) * nd)


def _attn_proj_call(x3, w_cat, b_cat, w_proj, b_proj, bias4,
                    *, t_len, groups, scale):
    B, C, N = x3.shape
    blk = groups * t_len
    nblk = B // blk
    nh = w_proj.shape[1]
    kern = functools.partial(_attn_proj_kernel, nh=nh, t_len=t_len,
                             groups=groups, scale=scale)
    return pl.pallas_call(
        kern,
        out_shape=(jax.ShapeDtypeStruct((B, C, N), jnp.float32),
                   jax.ShapeDtypeStruct((nblk, C, 1), jnp.float32),
                   jax.ShapeDtypeStruct((nblk, C, 1), jnp.float32)),
        grid=(nblk,),
        in_specs=[
            pl.BlockSpec((blk, C, N), lambda b: (b, 0, 0)),
            _full_spec(w_cat), _full_spec(b_cat),
            _full_spec(w_proj), _full_spec(b_proj), _full_spec(bias4),
        ],
        out_specs=(pl.BlockSpec((blk, C, N), lambda b: (b, 0, 0)),
                   pl.BlockSpec((1, C, 1), lambda b: (b, 0, 0)),
                   pl.BlockSpec((1, C, 1), lambda b: (b, 0, 0))),
        compiler_params=pltpu.CompilerParams(
            dimension_semantics=("parallel",)),
    )(x3, w_cat, b_cat, w_proj, b_proj, bias4)


def _bn_residual_call(zp, x3, bn_scale, bn_shift, *, blk):
    B, C, N = zp.shape
    nblk = B // blk
    return pl.pallas_call(
        _bn_residual_kernel,
        out_shape=jax.ShapeDtypeStruct((B, C, N), jnp.float32),
        grid=(nblk,),
        in_specs=[
            pl.BlockSpec((blk, C, N), lambda b: (b, 0, 0)),
            pl.BlockSpec((blk, C, N), lambda b: (b, 0, 0)),
            pl.BlockSpec((C, 1), lambda b: (0, 0)),
            pl.BlockSpec((C, 1), lambda b: (0, 0)),
        ],
        out_specs=pl.BlockSpec((blk, C, N), lambda b: (b, 0, 0)),
        input_output_aliases={0: 0},       # retire zp in place
        compiler_params=pltpu.CompilerParams(
            dimension_semantics=("parallel",)),
    )(zp, x3, bn_scale, bn_shift)


# ---------------------------- pure-JAX reference ------------------------------
def _reference_forward(x, params):
    """Module-faithful plain-JAX forward (NCHW in / NCHW out)."""
    B, C, H, W = x.shape
    nh = NUM_HEADS
    Bt = B // T
    N = H * W
    scale = float(N // SR_RATIO // SR_RATIO) ** 0.5   # module: multiplies logits

    z = jnp.transpose(x, (0, 2, 3, 1))                                 # (B,H,W,C)
    kv = z.reshape(-1, C) @ params["w_kv"].T + params["b_kv"]
    kv = kv.reshape(B, H, W, 2, nh)
    k = kv[..., 0, :]
    v = kv[..., 1, :]
    z5 = z.reshape(Bt, T, H, W, C)
    zq = jnp.concatenate([2.0 * z5[:, :-1] - z5[:, 1:], z5[:, -1:]], axis=1)
    q = zq.reshape(-1, C) @ params["w_q"].T + params["b_q"]
    q = q.reshape(B, H, W, nh)

    def heads(t):
        return jnp.transpose(t.reshape(Bt, T, N, nh), (0, 3, 1, 2))    # (Bt,nh,T,N)

    qh, kh, vh = heads(q), heads(k), heads(v)
    bias = params["rpb_table"][params["rel_index"].reshape(-1)]
    bias = jnp.transpose(bias.reshape(T_SP, T_SP, nh), (2, 0, 1))      # (nh,T,T)
    attn = jnp.einsum("bhtn,bhsn->bhts", qh, kh) * scale + bias[None]
    attn = jax.nn.softmax(attn, axis=-1)
    o = jnp.einsum("bhts,bhsn->bhtn", attn, vh)                        # (Bt,nh,T,N)
    o = jnp.transpose(o, (0, 2, 1, 3)).reshape(B, nh, H, W)
    zp = (jnp.einsum("bhxy,ch->bcxy", o, params["w_proj"])
          + params["b_proj"][None, :, None, None])
    mean = jnp.mean(zp, axis=(0, 2, 3), keepdims=True)
    var = jnp.var(zp, axis=(0, 2, 3), keepdims=True)
    zn = (zp - mean) * lax.rsqrt(var + BN_EPS)
    return x + (params["bn_gamma"][None, :, None, None] * zn
                + params["bn_beta"][None, :, None, None])


# ------------------------------ forward pass ---------------------------------
@functools.partial(jax.jit, static_argnames=("use_pallas",))
def msba_forward(x, params, *, use_pallas=True):
    """x: (B, C, H, W) float32, B divisible by T.  Returns (B, C, H, W)."""
    if not use_pallas:
        return _reference_forward(x, params)

    B, C, H, W = x.shape
    nh = NUM_HEADS
    N = H * W
    assert B % T == 0, "batch must be divisible by the temporal window T"
    assert N % 128 == 0, "H*W must be a multiple of 128 (lane-dense blocks)"
    Bt = B // T
    qk_scale = float(N // SR_RATIO // SR_RATIO) ** 0.5

    # pack several temporal groups per grid step: big blocks amortize the
    # ~0.35us per-step cost, but keep >=2 steps (v7x megacore) and bound unroll.
    per_group_bytes = T * C * N * 4
    vmem_groups = max(1, (1 << 21) // per_group_bytes)        # ~2 MiB target
    groups = max(1, min(Bt // 2, vmem_groups, 8)) if Bt >= 2 else 1
    while Bt % groups:
        groups -= 1
    blk = groups * T

    # relative position bias laid out as (T, T, nh, 1) so the kernel can fetch
    # an (nh, 1) column per (query-frame, key-frame) pair without relayout.
    bias4 = params["rpb_table"][params["rel_index"].reshape(-1)]
    bias4 = bias4.reshape(T_SP, T_SP, nh, 1)

    # fused projection weights: [W_q; W_k; W_v] (3nh, C), biases (3nh, 1)
    w_cat = jnp.concatenate([params["w_q"], params["w_kv"]], axis=0)
    b_cat = jnp.concatenate([params["b_q"], params["b_kv"]])[:, None]
    w_proj = params["w_proj"]
    b_proj = params["b_proj"][:, None]

    # natural layout: (B, C, N) is a free reshape of NCHW -- no XLA transpose.
    x3 = x.reshape(B, C, N)

    # --- kernel 1: q/kv linear + temporal diff + attention + 1x1 proj + sums --
    zp, sums, sqs = _attn_proj_call(x3, w_cat, b_cat, w_proj, b_proj, bias4,
                                    t_len=T, groups=groups, scale=qk_scale)

    # --- training-mode BatchNorm2d statistics from the per-block partials -----
    count = float(B * N)
    mean = jnp.sum(sums, axis=(0, 2)) / count                    # (C,)
    var = jnp.maximum(jnp.sum(sqs, axis=(0, 2)) / count - mean * mean, 0.0)
    inv = lax.rsqrt(var + BN_EPS)
    bn_scale = (params["bn_gamma"] * inv)[:, None]               # (C, 1)
    bn_shift = (params["bn_beta"] - mean * params["bn_gamma"] * inv)[:, None]

    # --- kernel 2: BatchNorm affine + residual add (output aliased onto zp) ---
    out3 = _bn_residual_call(zp, x3, bn_scale, bn_shift, blk=blk)
    return out3.reshape(B, C, H, W)


# ------------------------------ parameter init --------------------------------
def init_params(key):
    ks = jax.random.split(key, 8)
    # nn.Linear / nn.Conv2d store weight as (out, in); same layout here.
    s_qkv = 0.02          # small -> attention logits stay in a soft regime
    w_q = jax.random.normal(ks[0], (NUM_HEADS, DIM), jnp.float32) * s_qkv
    b_q = jax.random.normal(ks[1], (NUM_HEADS,), jnp.float32) * s_qkv
    w_kv = jax.random.normal(ks[2], (2 * NUM_HEADS, DIM), jnp.float32) * s_qkv
    b_kv = jax.random.normal(ks[3], (2 * NUM_HEADS,), jnp.float32) * s_qkv
    # Conv2d(num_heads, dim, 1) weight (dim, nh, 1, 1) squeezed -> (dim, nh)
    s_p = 1.0 / np.sqrt(NUM_HEADS)
    w_proj = jax.random.uniform(ks[4], (DIM, NUM_HEADS), jnp.float32, -s_p, s_p)
    b_proj = jax.random.uniform(ks[5], (DIM,), jnp.float32, -s_p, s_p)
    # relative_position_bias_table: (2*T_sp-1, num_heads)
    rpb_table = jax.random.normal(ks[6], (2 * T_SP - 1, NUM_HEADS),
                                  jnp.float32) * 0.5
    # NOTE: the module's _init_weights zeroes BatchNorm gamma/beta, which makes
    # the forward exactly identity; nonzero values actually exercise the path.
    bn_gamma = jnp.ones((DIM,), jnp.float32)
    bn_beta = jax.random.normal(ks[7], (DIM,), jnp.float32) * 0.02
    # relative_position_index for the T_sp == T path
    coords = jnp.arange(T_SP)
    rel_index = (coords[:, None] - coords[None, :]) + (T_SP - 1)   # (T_sp, T_sp)
    return dict(w_q=w_q, b_q=b_q, w_kv=w_kv, b_kv=b_kv,
                w_proj=w_proj, b_proj=b_proj,
                rpb_table=rpb_table, rel_index=rel_index,
                bn_gamma=bn_gamma, bn_beta=bn_beta)


# ------------------------------------ main ------------------------------------
if __name__ == "__main__":
    key = jax.random.PRNGKey(0)
    pkey, xkey = jax.random.split(key)
    params = init_params(pkey)

    B = 2 * T            # two temporal groups of T frames
    H, W = 16, 16        # H*W = 256 -> lane-dense (multiple of 128)
    x = jax.random.normal(xkey, (B, DIM, H, W), jnp.float32)

    out = jax.block_until_ready(msba_forward(x, params, use_pallas=True))
    ref = jax.block_until_ready(msba_forward(x, params, use_pallas=False))

    assert out.shape == (B, DIM, H, W)
    # Softmax now uses an exact divide, so the remaining differences come only
    # from matmul precision / accumulation order (amplified by the BN 1/std).
    np.testing.assert_allclose(np.asarray(out), np.asarray(ref),
                               rtol=1e-2, atol=5e-3)
    print("KERNEL_OK")
</pallas_src>

<mosaic_0001>
module attributes {stable_mosaic.version = 11 : i64} {
  func.func @_attn_proj_kernel(%arg0: i32, %arg1: memref<4x8x256xf32, #tpu.memory_space<vmem>>, %arg2: memref<12x8xf32, #tpu.memory_space<vmem>>, %arg3: memref<12x1xf32, #tpu.memory_space<vmem>>, %arg4: memref<8x4xf32, #tpu.memory_space<vmem>>, %arg5: memref<8x1xf32, #tpu.memory_space<vmem>>, %arg6: memref<4x4x4x1xf32, #tpu.memory_space<vmem>>, %arg7: memref<4x8x256xf32, #tpu.memory_space<vmem>>, %arg8: memref<1x8x1xf32, #tpu.memory_space<vmem>>, %arg9: memref<1x8x1xf32, #tpu.memory_space<vmem>>) attributes {dimension_semantics = [#tpu.dimension_semantics<parallel>], iteration_bounds = array<i64: 2>, scalar_prefetch = 0 : i64, scratch_operands = 0 : i64, tpu.core_type = #tpu.core_type<tc>, window_params = [{transform_indices = @transform_0, window_bounds = array<i64: 4, 8, 256>}, {pipeline_mode = #tpu.pipeline_mode<synchronous>, transform_indices = @transform_1, window_bounds = array<i64: 12, 8>}, {pipeline_mode = #tpu.pipeline_mode<synchronous>, transform_indices = @transform_2, window_bounds = array<i64: 12, 1>}, {pipeline_mode = #tpu.pipeline_mode<synchronous>, transform_indices = @transform_3, window_bounds = array<i64: 8, 4>}, {pipeline_mode = #tpu.pipeline_mode<synchronous>, transform_indices = @transform_4, window_bounds = array<i64: 8, 1>}, {pipeline_mode = #tpu.pipeline_mode<synchronous>, transform_indices = @transform_5, window_bounds = array<i64: 4, 4, 4, 1>}, {transform_indices = @transform_6, window_bounds = array<i64: 4, 8, 256>}, {transform_indices = @transform_7, window_bounds = array<i64: 1, 8, 1>}, {transform_indices = @transform_8, window_bounds = array<i64: 1, 8, 1>}]} {
    %c0 = arith.constant 0 : index
    %c0_0 = arith.constant 0 : index
    %0 = vector.load %arg2[%c0, %c0_0] : memref<12x8xf32, #tpu.memory_space<vmem>>, vector<12x8xf32>
    %c0_1 = arith.constant 0 : index
    %c0_2 = arith.constant 0 : index
    %1 = vector.load %arg3[%c0_1, %c0_2] : memref<12x1xf32, #tpu.memory_space<vmem>>, vector<12x1xf32>
    %c0_3 = arith.constant 0 : index
    %c0_4 = arith.constant 0 : index
    %2 = vector.load %arg4[%c0_3, %c0_4] : memref<8x4xf32, #tpu.memory_space<vmem>>, vector<8x4xf32>
    %c0_5 = arith.constant 0 : index
    %c0_6 = arith.constant 0 : index
    %3 = vector.load %arg5[%c0_5, %c0_6] : memref<8x1xf32, #tpu.memory_space<vmem>>, vector<8x1xf32>
    %cst = arith.constant 0.000000e+00 : f32
    %4 = vector.broadcast %cst : f32 to vector<8x1xf32>
    %cst_7 = arith.constant 0.000000e+00 : f32
    %5 = vector.broadcast %cst_7 : f32 to vector<8x1xf32>
    %c0_8 = arith.constant 0 : index
    %c0_9 = arith.constant 0 : index
    %c0_10 = arith.constant 0 : index
    %6 = vector.load %arg1[%c0_8, %c0_9, %c0_10] : memref<4x8x256xf32, #tpu.memory_space<vmem>>, vector<1x8x256xf32>
    %7 = vector.shape_cast %6 : vector<1x8x256xf32> to vector<8x256xf32>
    %cst_11 = arith.constant dense<0.000000e+00> : vector<12x256xf32>
    %8 = tpu.matmul %0, %7, %cst_11 {dimension_numbers = #tpu.dot_dimension_numbers<[1], [0], [0], [1], [0, 0, 1, 1], [], []>} : vector<12x8xf32>, vector<8x256xf32>, vector<12x256xf32> -> vector<12x256xf32>
    %9 = vector.broadcast %1 : vector<12x1xf32> to vector<12x256xf32>
    %10 = arith.addf %8, %9 : vector<12x256xf32>
    %c1 = arith.constant 1 : index
    %c0_12 = arith.constant 0 : index
    %c0_13 = arith.constant 0 : index
    %11 = vector.load %arg1[%c1, %c0_12, %c0_13] : memref<4x8x256xf32, #tpu.memory_space<vmem>>, vector<1x8x256xf32>
    %12 = vector.shape_cast %11 : vector<1x8x256xf32> to vector<8x256xf32>
    %cst_14 = arith.constant dense<0.000000e+00> : vector<12x256xf32>
    %13 = tpu.matmul %0, %12, %cst_14 {dimension_numbers = #tpu.dot_dimension_numbers<[1], [0], [0], [1], [0, 0, 1, 1], [], []>} : vector<12x8xf32>, vector<8x256xf32>, vector<12x256xf32> -> vector<12x256xf32>
    %14 = vector.broadcast %1 : vector<12x1xf32> to vector<12x256xf32>
    %15 = arith.addf %13, %14 : vector<12x256xf32>
    %c2 = arith.constant 2 : index
    %c0_15 = arith.constant 0 : index
    %c0_16 = arith.constant 0 : index
    %16 = vector.load %arg1[%c2, %c0_15, %c0_16] : memref<4x8x256xf32, #tpu.memory_space<vmem>>, vector<1x8x256xf32>
    %17 = vector.shape_cast %16 : vector<1x8x256xf32> to vector<8x256xf32>
    %cst_17 = arith.constant dense<0.000000e+00> : vector<12x256xf32>
    %18 = tpu.matmul %0, %17, %cst_17 {dimension_numbers = #tpu.dot_dimension_numbers<[1], [0], [0], [1], [0, 0, 1, 1], [], []>} : vector<12x8xf32>, vector<8x256xf32>, vector<12x256xf32> -> vector<12x256xf32>
    %19 = vector.broadcast %1 : vector<12x1xf32> to vector<12x256xf32>
    %20 = arith.addf %18, %19 : vector<12x256xf32>
    %c3 = arith.constant 3 : index
    %c0_18 = arith.constant 0 : index
    %c0_19 = arith.constant 0 : index
    %21 = vector.load %arg1[%c3, %c0_18, %c0_19] : memref<4x8x256xf32, #tpu.memory_space<vmem>>, vector<1x8x256xf32>
    %22 = vector.shape_cast %21 : vector<1x8x256xf32> to vector<8x256xf32>
    %cst_20 = arith.constant dense<0.000000e+00> : vector<12x256xf32>
    %23 = tpu.matmul %0, %22, %cst_20 {dimension_numbers = #tpu.dot_dimension_numbers<[1], [0], [0], [1], [0, 0, 1, 1], [], []>} : vector<12x8xf32>, vector<8x256xf32>, vector<12x256xf32> -> vector<12x256xf32>
    %24 = vector.broadcast %1 : vector<12x1xf32> to vector<12x256xf32>
    %25 = arith.addf %23, %24 : vector<12x256xf32>
    %26 = vector.extract_strided_slice %10 {offsets = [0, 0], sizes = [4, 256], strides = [1, 1]} : vector<12x256xf32> to vector<4x256xf32>
    %27 = vector.extract_strided_slice %15 {offsets = [0, 0], sizes = [4, 256], strides = [1, 1]} : vector<12x256xf32> to vector<4x256xf32>
    %28 = vector.extract_strided_slice %20 {offsets = [0, 0], sizes = [4, 256], strides = [1, 1]} : vector<12x256xf32> to vector<4x256xf32>
    %29 = vector.extract_strided_slice %25 {offsets = [0, 0], sizes = [4, 256], strides = [1, 1]} : vector<12x256xf32> to vector<4x256xf32>
    %30 = vector.extract_strided_slice %10 {offsets = [4, 0], sizes = [4, 256], strides = [1, 1]} : vector<12x256xf32> to vector<4x256xf32>
    %31 = vector.extract_strided_slice %15 {offsets = [4, 0], sizes = [4, 256], strides = [1, 1]} : vector<12x256xf32> to vector<4x256xf32>
    %32 = vector.extract_strided_slice %20 {offsets = [4, 0], sizes = [4, 256], strides = [1, 1]} : vector<12x256xf32> to vector<4x256xf32>
    %33 = vector.extract_strided_slice %25 {offsets = [4, 0], sizes = [4, 256], strides = [1, 1]} : vector<12x256xf32> to vector<4x256xf32>
    %34 = vector.extract_strided_slice %10 {offsets = [8, 0], sizes = [4, 256], strides = [1, 1]} : vector<12x256xf32> to vector<4x256xf32>
    %35 = vector.extract_strided_slice %15 {offsets = [8, 0], sizes = [4, 256], strides = [1, 1]} : vector<12x256xf32> to vector<4x256xf32>
    %36 = vector.extract_strided_slice %20 {offsets = [8, 0], sizes = [4, 256], strides = [1, 1]} : vector<12x256xf32> to vector<4x256xf32>
    %37 = vector.extract_strided_slice %25 {offsets = [8, 0], sizes = [4, 256], strides = [1, 1]} : vector<12x256xf32> to vector<4x256xf32>
    %cst_21 = arith.constant 2.000000e+00 : f32
    %38 = vector.broadcast %cst_21 : f32 to vector<4x256xf32>
    %39 = arith.mulf %38, %26 : vector<4x256xf32>
    %40 = arith.subf %39, %27 : vector<4x256xf32>
    %cst_22 = arith.constant 2.000000e+00 : f32
    %41 = vector.broadcast %cst_22 : f32 to vector<4x256xf32>
    %42 = arith.mulf %41, %27 : vector<4x256xf32>
    %43 = arith.subf %42, %28 : vector<4x256xf32>
    %cst_23 = arith.constant 2.000000e+00 : f32
    %44 = vector.broadcast %cst_23 : f32 to vector<4x256xf32>
    %45 = arith.mulf %44, %28 : vector<4x256xf32>
    %46 = arith.subf %45, %29 : vector<4x256xf32>
    %47 = arith.mulf %40, %30 : vector<4x256xf32>
    %cst_24 = arith.constant dense<0.000000e+00> : vector<4xf32>
    %48 = vector.multi_reduction <add>, %47, %cst_24 [1] : vector<4x256xf32> to vector<4xf32>
    %49 = vector.shape_cast %48 : vector<4xf32> to vector<4x1xf32>
    %cst_25 = arith.constant 1.600000e+01 : f32
    %50 = vector.broadcast %cst_25 : f32 to vector<4x1xf32>
    %51 = arith.mulf %49, %50 : vector<4x1xf32>
    %c0_26 = arith.constant 0 : index
    %c0_27 = arith.constant 0 : index
    %c0_28 = arith.constant 0 : index
    %c0_29 = arith.constant 0 : index
    %52 = vector.load %arg6[%c0_26, %c0_27, %c0_28, %c0_29] : memref<4x4x4x1xf32, #tpu.memory_space<vmem>>, vector<1x1x4x1xf32>
    %53 = vector.shape_cast %52 : vector<1x1x4x1xf32> to vector<4x1xf32>
    %54 = arith.addf %51, %53 : vector<4x1xf32>
    %55 = arith.mulf %40, %31 : vector<4x256xf32>
    %cst_30 = arith.constant dense<0.000000e+00> : vector<4xf32>
    %56 = vector.multi_reduction <add>, %55, %cst_30 [1] : vector<4x256xf32> to vector<4xf32>
    %57 = vector.shape_cast %56 : vector<4xf32> to vector<4x1xf32>
    %cst_31 = arith.constant 1.600000e+01 : f32
    %58 = vector.broadcast %cst_31 : f32 to vector<4x1xf32>
    %59 = arith.mulf %57, %58 : vector<4x1xf32>
    %c0_32 = arith.constant 0 : index
    %c1_33 = arith.constant 1 : index
    %c0_34 = arith.constant 0 : index
    %c0_35 = arith.constant 0 : index
    %60 = vector.load %arg6[%c0_32, %c1_33, %c0_34, %c0_35] : memref<4x4x4x1xf32, #tpu.memory_space<vmem>>, vector<1x1x4x1xf32>
    %61 = vector.shape_cast %60 : vector<1x1x4x1xf32> to vector<4x1xf32>
    %62 = arith.addf %59, %61 : vector<4x1xf32>
    %63 = arith.mulf %40, %32 : vector<4x256xf32>
    %cst_36 = arith.constant dense<0.000000e+00> : vector<4xf32>
    %64 = vector.multi_reduction <add>, %63, %cst_36 [1] : vector<4x256xf32> to vector<4xf32>
    %65 = vector.shape_cast %64 : vector<4xf32> to vector<4x1xf32>
    %cst_37 = arith.constant 1.600000e+01 : f32
    %66 = vector.broadcast %cst_37 : f32 to vector<4x1xf32>
    %67 = arith.mulf %65, %66 : vector<4x1xf32>
    %c0_38 = arith.constant 0 : index
    %c2_39 = arith.constant 2 : index
    %c0_40 = arith.constant 0 : index
    %c0_41 = arith.constant 0 : index
    %68 = vector.load %arg6[%c0_38, %c2_39, %c0_40, %c0_41] : memref<4x4x4x1xf32, #tpu.memory_space<vmem>>, vector<1x1x4x1xf32>
    %69 = vector.shape_cast %68 : vector<1x1x4x1xf32> to vector<4x1xf32>
    %70 = arith.addf %67, %69 : vector<4x1xf32>
    %71 = arith.mulf %40, %33 : vector<4x256xf32>
    %cst_42 = arith.constant dense<0.000000e+00> : vector<4xf32>
    %72 = vector.multi_reduction <add>, %71, %cst_42 [1] : vector<4x256xf32> to vector<4xf32>
    %73 = vector.shape_cast %72 : vector<4xf32> to vector<4x1xf32>
    %cst_43 = arith.constant 1.600000e+01 : f32
    %74 = vector.broadcast %cst_43 : f32 to vector<4x1xf32>
    %75 = arith.mulf %73, %74 : vector<4x1xf32>
    %c0_44 = arith.constant 0 : index
    %c3_45 = arith.constant 3 : index
    %c0_46 = arith.constant 0 : index
    %c0_47 = arith.constant 0 : index
    %76 = vector.load %arg6[%c0_44, %c3_45, %c0_46, %c0_47] : memref<4x4x4x1xf32, #tpu.memory_space<vmem>>, vector<1x1x4x1xf32>
    %77 = vector.shape_cast %76 : vector<1x1x4x1xf32> to vector<4x1xf32>
    %78 = arith.addf %75, %77 : vector<4x1xf32>
    %79 = arith.maximumf %54, %62 : vector<4x1xf32>
    %80 = arith.maximumf %79, %70 : vector<4x1xf32>
    %81 = arith.maximumf %80, %78 : vector<4x1xf32>
    %82 = arith.subf %54, %81 : vector<4x1xf32>
    %83 = math.exp %82 : vector<4x1xf32>
    %84 = arith.subf %62, %81 : vector<4x1xf32>
    %85 = math.exp %84 : vector<4x1xf32>
    %86 = arith.subf %70, %81 : vector<4x1xf32>
    %87 = math.exp %86 : vector<4x1xf32>
    %88 = arith.subf %78, %81 : vector<4x1xf32>
    %89 = math.exp %88 : vector<4x1xf32>
    %90 = arith.addf %83, %85 : vector<4x1xf32>
    %91 = arith.addf %90, %87 : vector<4x1xf32>
    %92 = arith.addf %91, %89 : vector<4x1xf32>
    %cst_48 = arith.constant 1.000000e+00 : f32
    %93 = vector.broadcast %cst_48 : f32 to vector<4x1xf32>
    %94 = arith.divf %93, %92 : vector<4x1xf32>
    %95 = arith.mulf %83, %94 : vector<4x1xf32>
    %96 = vector.broadcast %95 : vector<4x1xf32> to vector<4x256xf32>
    %97 = arith.mulf %96, %34 : vector<4x256xf32>
    %98 = arith.mulf %85, %94 : vector<4x1xf32>
    %99 = vector.broadcast %98 : vector<4x1xf32> to vector<4x256xf32>
    %100 = arith.mulf %99, %35 : vector<4x256xf32>
    %101 = arith.addf %97, %100 : vector<4x256xf32>
    %102 = arith.mulf %87, %94 : vector<4x1xf32>
    %103 = vector.broadcast %102 : vector<4x1xf32> to vector<4x256xf32>
    %104 = arith.mulf %103, %36 : vector<4x256xf32>
    %105 = arith.addf %101, %104 : vector<4x256xf32>
    %106 = arith.mulf %89, %94 : vector<4x1xf32>
    %107 = vector.broadcast %106 : vector<4x1xf32> to vector<4x256xf32>
    %108 = arith.mulf %107, %37 : vector<4x256xf32>
    %109 = arith.addf %105, %108 : vector<4x256xf32>
    %cst_49 = arith.constant dense<0.000000e+00> : vector<8x256xf32>
    %110 = tpu.matmul %2, %109, %cst_49 {dimension_numbers = #tpu.dot_dimension_numbers<[1], [0], [0], [1], [0, 0, 1, 1], [], []>} : vector<8x4xf32>, vector<4x256xf32>, vector<8x256xf32> -> vector<8x256xf32>
    %111 = vector.broadcast %3 : vector<8x1xf32> to vector<8x256xf32>
    %112 = arith.addf %110, %111 : vector<8x256xf32>
    %c0_50 = arith.constant 0 : index
    %c0_51 = arith.constant 0 : index
    %c0_52 = arith.constant 0 : index
    %113 = vector.load %arg7[%c0_50, %c0_51, %c0_52] : memref<4x8x256xf32, #tpu.memory_space<vmem>>, vector<1x8x256xf32>
    %114 = vector.shape_cast %113 : vector<1x8x256xf32> to vector<8x256xf32>
    %115 = vector.shape_cast %112 : vector<8x256xf32> to vector<1x8x256xf32>
    tpu.vector_store %arg7[%c0_50, %c0_51, %c0_52], %115 {strides = array<i32>} : memref<4x8x256xf32, #tpu.memory_space<vmem>>, vector<1x8x256xf32>,
    %cst_53 = arith.constant dense<0.000000e+00> : vector<8xf32>
    %116 = vector.multi_reduction <add>, %112, %cst_53 [1] : vector<8x256xf32> to vector<8xf32>
    %117 = vector.shape_cast %116 : vector<8xf32> to vector<8x1xf32>
    %118 = arith.addf %4, %117 : vector<8x1xf32>
    %119 = arith.mulf %112, %112 : vector<8x256xf32>
    %cst_54 = arith.constant dense<0.000000e+00> : vector<8xf32>
    %120 = vector.multi_reduction <add>, %119, %cst_54 [1] : vector<8x256xf32> to vector<8xf32>
    %121 = vector.shape_cast %120 : vector<8xf32> to vector<8x1xf32>
    %122 = arith.addf %5, %121 : vector<8x1xf32>
    %123 = arith.mulf %43, %30 : vector<4x256xf32>
    %cst_55 = arith.constant dense<0.000000e+00> : vector<4xf32>
    %124 = vector.multi_reduction <add>, %123, %cst_55 [1] : vector<4x256xf32> to vector<4xf32>
    %125 = vector.shape_cast %124 : vector<4xf32> to vector<4x1xf32>
    %cst_56 = arith.constant 1.600000e+01 : f32
    %126 = vector.broadcast %cst_56 : f32 to vector<4x1xf32>
    %127 = arith.mulf %125, %126 : vector<4x1xf32>
    %c1_57 = arith.constant 1 : index
    %c0_58 = arith.constant 0 : index
    %c0_59 = arith.constant 0 : index
    %c0_60 = arith.constant 0 : index
    %128 = vector.load %arg6[%c1_57, %c0_58, %c0_59, %c0_60] : memref<4x4x4x1xf32, #tpu.memory_space<vmem>>, vector<1x1x4x1xf32>
    %129 = vector.shape_cast %128 : vector<1x1x4x1xf32> to vector<4x1xf32>
    %130 = arith.addf %127, %129 : vector<4x1xf32>
    %131 = arith.mulf %43, %31 : vector<4x256xf32>
    %cst_61 = arith.constant dense<0.000000e+00> : vector<4xf32>
    %132 = vector.multi_reduction <add>, %131, %cst_61 [1] : vector<4x256xf32> to vector<4xf32>
    %133 = vector.shape_cast %132 : vector<4xf32> to vector<4x1xf32>
    %cst_62 = arith.constant 1.600000e+01 : f32
    %134 = vector.broadcast %cst_62 : f32 to vector<4x1xf32>
    %135 = arith.mulf %133, %134 : vector<4x1xf32>
    %c1_63 = arith.constant 1 : index
    %c1_64 = arith.constant 1 : index
    %c0_65 = arith.constant 0 : index
    %c0_66 = arith.constant 0 : index
    %136 = vector.load %arg6[%c1_63, %c1_64, %c0_65, %c0_66] : memref<4x4x4x1xf32, #tpu.memory_space<vmem>>, vector<1x1x4x1xf32>
    %137 = vector.shape_cast %136 : vector<1x1x4x1xf32> to vector<4x1xf32>
    %138 = arith.addf %135, %137 : vector<4x1xf32>
    %139 = arith.mulf %43, %32 : vector<4x256xf32>
    %cst_67 = arith.constant dense<0.000000e+00> : vector<4xf32>
    %140 = vector.multi_reduction <add>, %139, %cst_67 [1] : vector<4x256xf32> to vector<4xf32>
    %141 = vector.shape_cast %140 : vector<4xf32> to vector<4x1xf32>
    %cst_68 = arith.constant 1.600000e+01 : f32
    %142 = vector.broadcast %cst_68 : f32 to vector<4x1xf32>
    %143 = arith.mulf %141, %142 : vector<4x1xf32>
    %c1_69 = arith.constant 1 : index
    %c2_70 = arith.constant 2 : index
    %c0_71 = arith.constant 0 : index
    %c0_72 = arith.constant 0 : index
    %144 = vector.load %arg6[%c1_69, %c2_70, %c0_71, %c0_72] : memref<4x4x4x1xf32, #tpu.memory_space<vmem>>, vector<1x1x4x1xf32>
    %145 = vector.shape_cast %144 : vector<1x1x4x1xf32> to vector<4x1xf32>
    %146 = arith.addf %143, %145 : vector<4x1xf32>
    %147 = arith.mulf %43, %33 : vector<4x256xf32>
    %cst_73 = arith.constant dense<0.000000e+00> : vector<4xf32>
    %148 = vector.multi_reduction <add>, %147, %cst_73 [1] : vector<4x256xf32> to vector<4xf32>
    %149 = vector.shape_cast %148 : vector<4xf32> to vector<4x1xf32>
    %cst_74 = arith.constant 1.600000e+01 : f32
    %150 = vector.broadcast %cst_74 : f32 to vector<4x1xf32>
    %151 = arith.mulf %149, %150 : vector<4x1xf32>
    %c1_75 = arith.constant 1 : index
    %c3_76 = arith.constant 3 : index
    %c0_77 = arith.constant 0 : index
    %c0_78 = arith.constant 0 : index
    %152 = vector.load %arg6[%c1_75, %c3_76, %c0_77, %c0_78] : memref<4x4x4x1xf32, #tpu.memory_space<vmem>>, vector<1x1x4x1xf32>
    %153 = vector.shape_cast %152 : vector<1x1x4x1xf32> to vector<4x1xf32>
    %154 = arith.addf %151, %153 : vector<4x1xf32>
    %155 = arith.maximumf %130, %138 : vector<4x1xf32>
    %156 = arith.maximumf %155, %146 : vector<4x1xf32>
    %157 = arith.maximumf %156, %154 : vector<4x1xf32>
    %158 = arith.subf %130, %157 : vector<4x1xf32>
    %159 = math.exp %158 : vector<4x1xf32>
    %160 = arith.subf %138, %157 : vector<4x1xf32>
    %161 = math.exp %160 : vector<4x1xf32>
    %162 = arith.subf %146, %157 : vector<4x1xf32>
    %163 = math.exp %162 : vector<4x1xf32>
    %164 = arith.subf %154, %157 : vector<4x1xf32>
    %165 = math.exp %164 : vector<4x1xf32>
    %166 = arith.addf %159, %161 : vector<4x1xf32>
    %167 = arith.addf %166, %163 : vector<4x1xf32>
    %168 = arith.addf %167, %165 : vector<4x1xf32>
    %cst_79 = arith.constant 1.000000e+00 : f32
    %169 = vector.broadcast %cst_79 : f32 to vector<4x1xf32>
    %170 = arith.divf %169, %168 : vector<4x1xf32>
    %171 = arith.mulf %159, %170 : vector<4x1xf32>
    %172 = vector.broadcast %171 : vector<4x1xf32> to vector<4x256xf32>
    %173 = arith.mulf %172, %34 : vector<4x256xf32>
    %174 = arith.mulf %161, %170 : vector<4x1xf32>
    %175 = vector.broadcast %174 : vector<4x1xf32> to vector<4x256xf32>
    %176 = arith.mulf %175, %35 : vector<4x256xf32>
    %177 = arith.addf %173, %176 : vector<4x256xf32>
    %178 = arith.mulf %163, %170 : vector<4x1xf32>
    %179 = vector.broadcast %178 : vector<4x1xf32> to vector<4x256xf32>
    %180 = arith.mulf %179, %36 : vector<4x256xf32>
    %181 = arith.addf %177, %180 : vector<4x256xf32>
    %182 = arith.mulf %165, %170 : vector<4x1xf32>
    %183 = vector.broadcast %182 : vector<4x1xf32> to vector<4x256xf32>
    %184 = arith.mulf %183, %37 : vector<4x256xf32>
    %185 = arith.addf %181, %184 : vector<4x256xf32>
    %cst_80 = arith.constant dense<0.000000e+00> : vector<8x256xf32>
    %186 = tpu.matmul %2, %185, %cst_80 {dimension_numbers = #tpu.dot_dimension_numbers<[1], [0], [0], [1], [0, 0, 1, 1], [], []>} : vector<8x4xf32>, vector<4x256xf32>, vector<8x256xf32> -> vector<8x256xf32>
    %187 = vector.broadcast %3 : vector<8x1xf32> to vector<8x256xf32>
    %188 = arith.addf %186, %187 : vector<8x256xf32>
    %c1_81 = arith.constant 1 : index
    %c0_82 = arith.constant 0 : index
    %c0_83 = arith.constant 0 : index
    %189 = vector.load %arg7[%c1_81, %c0_82, %c0_83] : memref<4x8x256xf32, #tpu.memory_space<vmem>>, vector<1x8x256xf32>
    %190 = vector.shape_cast %189 : vector<1x8x256xf32> to vector<8x256xf32>
    %191 = vector.shape_cast %188 : vector<8x256xf32> to vector<1x8x256xf32>
    tpu.vector_store %arg7[%c1_81, %c0_82, %c0_83], %191 {strides = array<i32>} : memref<4x8x256xf32, #tpu.memory_space<vmem>>, vector<1x8x256xf32>,
    %cst_84 = arith.constant dense<0.000000e+00> : vector<8xf32>
    %192 = vector.multi_reduction <add>, %188, %cst_84 [1] : vector<8x256xf32> to vector<8xf32>
    %193 = vector.shape_cast %192 : vector<8xf32> to vector<8x1xf32>
    %194 = arith.addf %118, %193 : vector<8x1xf32>
    %195 = arith.mulf %188, %188 : vector<8x256xf32>
    %cst_85 = arith.constant dense<0.000000e+00> : vector<8xf32>
    %196 = vector.multi_reduction <add>, %195, %cst_85 [1] : vector<8x256xf32> to vector<8xf32>
    %197 = vector.shape_cast %196 : vector<8xf32> to vector<8x1xf32>
    %198 = arith.addf %122, %197 : vector<8x1xf32>
    %199 = arith.mulf %46, %30 : vector<4x256xf32>
    %cst_86 = arith.constant dense<0.000000e+00> : vector<4xf32>
    %200 = vector.multi_reduction <add>, %199, %cst_86 [1] : vector<4x256xf32> to vector<4xf32>
    %201 = vector.shape_cast %200 : vector<4xf32> to vector<4x1xf32>
    %cst_87 = arith.constant 1.600000e+01 : f32
    %202 = vector.broadcast %cst_87 : f32 to vector<4x1xf32>
    %203 = arith.mulf %201, %202 : vector<4x1xf32>
    %c2_88 = arith.constant 2 : index
    %c0_89 = arith.constant 0 : index
    %c0_90 = arith.constant 0 : index
    %c0_91 = arith.constant 0 : index
    %204 = vector.load %arg6[%c2_88, %c0_89, %c0_90, %c0_91] : memref<4x4x4x1xf32, #tpu.memory_space<vmem>>, vector<1x1x4x1xf32>
    %205 = vector.shape_cast %204 : vector<1x1x4x1xf32> to vector<4x1xf32>
    %206 = arith.addf %203, %205 : vector<4x1xf32>
    %207 = arith.mulf %46, %31 : vector<4x256xf32>
    %cst_92 = arith.constant dense<0.000000e+00> : vector<4xf32>
    %208 = vector.multi_reduction <add>, %207, %cst_92 [1] : vector<4x256xf32> to vector<4xf32>
    %209 = vector.shape_cast %208 : vector<4xf32> to vector<4x1xf32>
    %cst_93 = arith.constant 1.600000e+01 : f32
    %210 = vector.broadcast %cst_93 : f32 to vector<4x1xf32>
    %211 = arith.mulf %209, %210 : vector<4x1xf32>
    %c2_94 = arith.constant 2 : index
    %c1_95 = arith.constant 1 : index
    %c0_96 = arith.constant 0 : index
    %c0_97 = arith.constant 0 : index
    %212 = vector.load %arg6[%c2_94, %c1_95, %c0_96, %c0_97] : memref<4x4x4x1xf32, #tpu.memory_space<vmem>>, vector<1x1x4x1xf32>
    %213 = vector.shape_cast %212 : vector<1x1x4x1xf32> to vector<4x1xf32>
    %214 = arith.addf %211, %213 : vector<4x1xf32>
    %215 = arith.mulf %46, %32 : vector<4x256xf32>
    %cst_98 = arith.constant dense<0.000000e+00> : vector<4xf32>
    %216 = vector.multi_reduction <add>, %215, %cst_98 [1] : vector<4x256xf32> to vector<4xf32>
    %217 = vector.shape_cast %216 : vector<4xf32> to vector<4x1xf32>
    %cst_99 = arith.constant 1.600000e+01 : f32
    %218 = vector.broadcast %cst_99 : f32 to vector<4x1xf32>
    %219 = arith.mulf %217, %218 : vector<4x1xf32>
    %c2_100 = arith.constant 2 : index
    %c2_101 = arith.constant 2 : index
    %c0_102 = arith.constant 0 : index
    %c0_103 = arith.constant 0 : index
    %220 = vector.load %arg6[%c2_100, %c2_101, %c0_102, %c0_103] : memref<4x4x4x1xf32, #tpu.memory_space<vmem>>, vector<1x1x4x1xf32>
    %221 = vector.shape_cast %220 : vector<1x1x4x1xf32> to vector<4x1xf32>
    %222 = arith.addf %219, %221 : vector<4x1xf32>
    %223 = arith.mulf %46, %33 : vector<4x256xf32>
    %cst_104 = arith.constant dense<0.000000e+00> : vector<4xf32>
    %224 = vector.multi_reduction <add>, %223, %cst_104 [1] : vector<4x256xf32> to vector<4xf32>
    %225 = vector.shape_cast %224 : vector<4xf32> to vector<4x1xf32>
    %cst_105 = arith.constant 1.600000e+01 : f32
    %226 = vector.broadcast %cst_105 : f32 to vector<4x1xf32>
    %227 = arith.mulf %225, %226 : vector<4x1xf32>
    %c2_106 = arith.constant 2 : index
    %c3_107 = arith.constant 3 : index
    %c0_108 = arith.constant 0 : index
    %c0_109 = arith.constant 0 : index
    %228 = vector.load %arg6[%c2_106, %c3_107, %c0_108, %c0_109] : memref<4x4x4x1xf32, #tpu.memory_space<vmem>>, vector<1x1x4x1xf32>
    %229 = vector.shape_cast %228 : vector<1x1x4x1xf32> to vector<4x1xf32>
    %230 = arith.addf %227, %229 : vector<4x1xf32>
    %231 = arith.maximumf %206, %214 : vector<4x1xf32>
    %232 = arith.maximumf %231, %222 : vector<4x1xf32>
    %233 = arith.maximumf %232, %230 : vector<4x1xf32>
    %234 = arith.subf %206, %233 : vector<4x1xf32>
    %235 = math.exp %234 : vector<4x1xf32>
    %236 = arith.subf %214, %233 : vector<4x1xf32>
    %237 = math.exp %236 : vector<4x1xf32>
    %238 = arith.subf %222, %233 : vector<4x1xf32>
    %239 = math.exp %238 : vector<4x1xf32>
    %240 = arith.subf %230, %233 : vector<4x1xf32>
    %241 = math.exp %240 : vector<4x1xf32>
    %242 = arith.addf %235, %237 : vector<4x1xf32>
    %243 = arith.addf %242, %239 : vector<4x1xf32>
    %244 = arith.addf %243, %241 : vector<4x1xf32>
    %cst_110 = arith.constant 1.000000e+00 : f32
    %245 = vector.broadcast %cst_110 : f32 to vector<4x1xf32>
    %246 = arith.divf %245, %244 : vector<4x1xf32>
    %247 = arith.mulf %235, %246 : vector<4x1xf32>
    %248 = vector.broadcast %247 : vector<4x1xf32> to vector<4x256xf32>
    %249 = arith.mulf %248, %34 : vector<4x256xf32>
    %250 = arith.mulf %237, %246 : vector<4x1xf32>
    %251 = vector.broadcast %250 : vector<4x1xf32> to vector<4x256xf32>
    %252 = arith.mulf %251, %35 : vector<4x256xf32>
    %253 = arith.addf %249, %252 : vector<4x256xf32>
    %254 = arith.mulf %239, %246 : vector<4x1xf32>
    %255 = vector.broadcast %254 : vector<4x1xf32> to vector<4x256xf32>
    %256 = arith.mulf %255, %36 : vector<4x256xf32>
    %257 = arith.addf %253, %256 : vector<4x256xf32>
    %258 = arith.mulf %241, %246 : vector<4x1xf32>
    %259 = vector.broadcast %258 : vector<4x1xf32> to vector<4x256xf32>
    %260 = arith.mulf %259, %37 : vector<4x256xf32>
    %261 = arith.addf %257, %260 : vector<4x256xf32>
    %cst_111 = arith.constant dense<0.000000e+00> : vector<8x256xf32>
    %262 = tpu.matmul %2, %261, %cst_111 {dimension_numbers = #tpu.dot_dimension_numbers<[1], [0], [0], [1], [0, 0, 1, 1], [], []>} : vector<8x4xf32>, vector<4x256xf32>, vector<8x256xf32> -> vector<8x256xf32>
    %263 = vector.broadcast %3 : vector<8x1xf32> to vector<8x256xf32>
    %264 = arith.addf %262, %263 : vector<8x256xf32>
    %c2_112 = arith.constant 2 : index
    %c0_113 = arith.constant 0 : index
    %c0_114 = arith.constant 0 : index
    %265 = vector.load %arg7[%c2_112, %c0_113, %c0_114] : memref<4x8x256xf32, #tpu.memory_space<vmem>>, vector<1x8x256xf32>
    %266 = vector.shape_cast %265 : vector<1x8x256xf32> to vector<8x256xf32>
    %267 = vector.shape_cast %264 : vector<8x256xf32> to vector<1x8x256xf32>
    tpu.vector_store %arg7[%c2_112, %c0_113, %c0_114], %267 {strides = array<i32>} : memref<4x8x256xf32, #tpu.memory_space<vmem>>, vector<1x8x256xf32>,
    %cst_115 = arith.constant dense<0.000000e+00> : vector<8xf32>
    %268 = vector.multi_reduction <add>, %264, %cst_115 [1] : vector<8x256xf32> to vector<8xf32>
    %269 = vector.shape_cast %268 : vector<8xf32> to vector<8x1xf32>
    %270 = arith.addf %194, %269 : vector<8x1xf32>
    %271 = arith.mulf %264, %264 : vector<8x256xf32>
    %cst_116 = arith.constant dense<0.000000e+00> : vector<8xf32>
    %272 = vector.multi_reduction <add>, %271, %cst_116 [1] : vector<8x256xf32> to vector<8xf32>
    %273 = vector.shape_cast %272 : vector<8xf32> to vector<8x1xf32>
    %274 = arith.addf %198, %273 : vector<8x1xf32>
    %275 = arith.mulf %29, %30 : vector<4x256xf32>
    %cst_117 = arith.constant dense<0.000000e+00> : vector<4xf32>
    %276 = vector.multi_reduction <add>, %275, %cst_117 [1] : vector<4x256xf32> to vector<4xf32>
    %277 = vector.shape_cast %276 : vector<4xf32> to vector<4x1xf32>
    %cst_118 = arith.constant 1.600000e+01 : f32
    %278 = vector.broadcast %cst_118 : f32 to vector<4x1xf32>
    %279 = arith.mulf %277, %278 : vector<4x1xf32>
    %c3_119 = arith.constant 3 : index
    %c0_120 = arith.constant 0 : index
    %c0_121 = arith.constant 0 : index
    %c0_122 = arith.constant 0 : index
    %280 = vector.load %arg6[%c3_119, %c0_120, %c0_121, %c0_122] : memref<4x4x4x1xf32, #tpu.memory_space<vmem>>, vector<1x1x4x1xf32>
    %281 = vector.shape_cast %280 : vector<1x1x4x1xf32> to vector<4x1xf32>
    %282 = arith.addf %279, %281 : vector<4x1xf32>
    %283 = arith.mulf %29, %31 : vector<4x256xf32>
    %cst_123 = arith.constant dense<0.000000e+00> : vector<4xf32>
    %284 = vector.multi_reduction <add>, %283, %cst_123 [1] : vector<4x256xf32> to vector<4xf32>
    %285 = vector.shape_cast %284 : vector<4xf32> to vector<4x1xf32>
    %cst_124 = arith.constant 1.600000e+01 : f32
    %286 = vector.broadcast %cst_124 : f32 to vector<4x1xf32>
    %287 = arith.mulf %285, %286 : vector<4x1xf32>
    %c3_125 = arith.constant 3 : index
    %c1_126 = arith.constant 1 : index
    %c0_127 = arith.constant 0 : index
    %c0_128 = arith.constant 0 : index
    %288 = vector.load %arg6[%c3_125, %c1_126, %c0_127, %c0_128] : memref<4x4x4x1xf32, #tpu.memory_space<vmem>>, vector<1x1x4x1xf32>
    %289 = vector.shape_cast %288 : vector<1x1x4x1xf32> to vector<4x1xf32>
    %290 = arith.addf %287, %289 : vector<4x1xf32>
    %291 = arith.mulf %29, %32 : vector<4x256xf32>
    %cst_129 = arith.constant dense<0.000000e+00> : vector<4xf32>
    %292 = vector.multi_reduction <add>, %291, %cst_129 [1] : vector<4x256xf32> to vector<4xf32>
    %293 = vector.shape_cast %292 : vector<4xf32> to vector<4x1xf32>
    %cst_130 = arith.constant 1.600000e+01 : f32
    %294 = vector.broadcast %cst_130 : f32 to vector<4x1xf32>
    %295 = arith.mulf %293, %294 : vector<4x1xf32>
    %c3_131 = arith.constant 3 : index
    %c2_132 = arith.constant 2 : index
    %c0_133 = arith.constant 0 : index
    %c0_134 = arith.constant 0 : index
    %296 = vector.load %arg6[%c3_131, %c2_132, %c0_133, %c0_134] : memref<4x4x4x1xf32, #tpu.memory_space<vmem>>, vector<1x1x4x1xf32>
    %297 = vector.shape_cast %296 : vector<1x1x4x1xf32> to vector<4x1xf32>
    %298 = arith.addf %295, %297 : vector<4x1xf32>
    %299 = arith.mulf %29, %33 : vector<4x256xf32>
    %cst_135 = arith.constant dense<0.000000e+00> : vector<4xf32>
    %300 = vector.multi_reduction <add>, %299, %cst_135 [1] : vector<4x256xf32> to vector<4xf32>
    %301 = vector.shape_cast %300 : vector<4xf32> to vector<4x1xf32>
    %cst_136 = arith.constant 1.600000e+01 : f32
    %302 = vector.broadcast %cst_136 : f32 to vector<4x1xf32>
    %303 = arith.mulf %301, %302 : vector<4x1xf32>
    %c3_137 = arith.constant 3 : index
    %c3_138 = arith.constant 3 : index
    %c0_139 = arith.constant 0 : index
    %c0_140 = arith.constant 0 : index
    %304 = vector.load %arg6[%c3_137, %c3_138, %c0_139, %c0_140] : memref<4x4x4x1xf32, #tpu.memory_space<vmem>>, vector<1x1x4x1xf32>
    %305 = vector.shape_cast %304 : vector<1x1x4x1xf32> to vector<4x1xf32>
    %306 = arith.addf %303, %305 : vector<4x1xf32>
    %307 = arith.maximumf %282, %290 : vector<4x1xf32>
    %308 = arith.maximumf %307, %298 : vector<4x1xf32>
    %309 = arith.maximumf %308, %306 : vector<4x1xf32>
    %310 = arith.subf %282, %309 : vector<4x1xf32>
    %311 = math.exp %310 : vector<4x1xf32>
    %312 = arith.subf %290, %309 : vector<4x1xf32>
    %313 = math.exp %312 : vector<4x1xf32>
    %314 = arith.subf %298, %309 : vector<4x1xf32>
    %315 = math.exp %314 : vector<4x1xf32>
    %316 = arith.subf %306, %309 : vector<4x1xf32>
    %317 = math.exp %316 : vector<4x1xf32>
    %318 = arith.addf %311, %313 : vector<4x1xf32>
    %319 = arith.addf %318, %315 : vector<4x1xf32>
    %320 = arith.addf %319, %317 : vector<4x1xf32>
    %cst_141 = arith.constant 1.000000e+00 : f32
    %321 = vector.broadcast %cst_141 : f32 to vector<4x1xf32>
    %322 = arith.divf %321, %320 : vector<4x1xf32>
    %323 = arith.mulf %311, %322 : vector<4x1xf32>
    %324 = vector.broadcast %323 : vector<4x1xf32> to vector<4x256xf32>
    %325 = arith.mulf %324, %34 : vector<4x256xf32>
    %326 = arith.mulf %313, %322 : vector<4x1xf32>
    %327 = vector.broadcast %326 : vector<4x1xf32> to vector<4x256xf32>
    %328 = arith.mulf %327, %35 : vector<4x256xf32>
    %329 = arith.addf %325, %328 : vector<4x256xf32>
    %330 = arith.mulf %315, %322 : vector<4x1xf32>
    %331 = vector.broadcast %330 : vector<4x1xf32> to vector<4x256xf32>
    %332 = arith.mulf %331, %36 : vector<4x256xf32>
    %333 = arith.addf %329, %332 : vector<4x256xf32>
    %334 = arith.mulf %317, %322 : vector<4x1xf32>
    %335 = vector.broadcast %334 : vector<4x1xf32> to vector<4x256xf32>
    %336 = arith.mulf %335, %37 : vector<4x256xf32>
    %337 = arith.addf %333, %336 : vector<4x256xf32>
    %cst_142 = arith.constant dense<0.000000e+00> : vector<8x256xf32>
    %338 = tpu.matmul %2, %337, %cst_142 {dimension_numbers = #tpu.dot_dimension_numbers<[1], [0], [0], [1], [0, 0, 1, 1], [], []>} : vector<8x4xf32>, vector<4x256xf32>, vector<8x256xf32> -> vector<8x256xf32>
    %339 = vector.broadcast %3 : vector<8x1xf32> to vector<8x256xf32>
    %340 = arith.addf %338, %339 : vector<8x256xf32>
    %c3_143 = arith.constant 3 : index
    %c0_144 = arith.constant 0 : index
    %c0_145 = arith.constant 0 : index
    %341 = vector.load %arg7[%c3_143, %c0_144, %c0_145] : memref<4x8x256xf32, #tpu.memory_space<vmem>>, vector<1x8x256xf32>
    %342 = vector.shape_cast %341 : vector<1x8x256xf32> to vector<8x256xf32>
    %343 = vector.shape_cast %340 : vector<8x256xf32> to vector<1x8x256xf32>
    tpu.vector_store %arg7[%c3_143, %c0_144, %c0_145], %343 {strides = array<i32>} : memref<4x8x256xf32, #tpu.memory_space<vmem>>, vector<1x8x256xf32>,
    %cst_146 = arith.constant dense<0.000000e+00> : vector<8xf32>
    %344 = vector.multi_reduction <add>, %340, %cst_146 [1] : vector<8x256xf32> to vector<8xf32>
    %345 = vector.shape_cast %344 : vector<8xf32> to vector<8x1xf32>
    %346 = arith.addf %270, %345 : vector<8x1xf32>
    %347 = arith.mulf %340, %340 : vector<8x256xf32>
    %cst_147 = arith.constant dense<0.000000e+00> : vector<8xf32>
    %348 = vector.multi_reduction <add>, %347, %cst_147 [1] : vector<8x256xf32> to vector<8xf32>
    %349 = vector.shape_cast %348 : vector<8xf32> to vector<8x1xf32>
    %350 = arith.addf %274, %349 : vector<8x1xf32>
    %c0_148 = arith.constant 0 : index
    %c0_149 = arith.constant 0 : index
    %c0_150 = arith.constant 0 : index
    %351 = vector.load %arg8[%c0_148, %c0_149, %c0_150] : memref<1x8x1xf32, #tpu.memory_space<vmem>>, vector<1x8x1xf32>
    %352 = vector.shape_cast %351 : vector<1x8x1xf32> to vector<8x1xf32>
    %353 = vector.shape_cast %346 : vector<8x1xf32> to vector<1x8x1xf32>
    tpu.vector_store %arg8[%c0_148, %c0_149, %c0_150], %353 {strides = array<i32>} : memref<1x8x1xf32, #tpu.memory_space<vmem>>, vector<1x8x1xf32>,
    %c0_151 = arith.constant 0 : index
    %c0_152 = arith.constant 0 : index
    %c0_153 = arith.constant 0 : index
    %354 = vector.load %arg9[%c0_151, %c0_152, %c0_153] : memref<1x8x1xf32, #tpu.memory_space<vmem>>, vector<1x8x1xf32>
    %355 = vector.shape_cast %354 : vector<1x8x1xf32> to vector<8x1xf32>
    %356 = vector.shape_cast %350 : vector<8x1xf32> to vector<1x8x1xf32>
    tpu.vector_store %arg9[%c0_151, %c0_152, %c0_153], %356 {strides = array<i32>} : memref<1x8x1xf32, #tpu.memory_space<vmem>>, vector<1x8x1xf32>,
    return
  }
  func.func @transform_0(%arg0: i32) -> (i32, i32, i32) {
    %c0_i32 = arith.constant 0 : i32
    %c0_i32_0 = arith.constant 0 : i32
    %c0_i32_1 = arith.constant 0 : i32
    return %arg0, %c0_i32, %c0_i32_0 : i32, i32, i32
  }
  func.func @transform_1(%arg0: i32) -> (i32, i32) {
    %c0_i32 = arith.constant 0 : i32
    %c0_i32_0 = arith.constant 0 : i32
    %c0_i32_1 = arith.constant 0 : i32
    return %c0_i32, %c0_i32_0 : i32, i32
  }
  func.func @transform_2(%arg0: i32) -> (i32, i32) {
    %c0_i32 = arith.constant 0 : i32
    %c0_i32_0 = arith.constant 0 : i32
    %c0_i32_1 = arith.constant 0 : i32
    return %c0_i32, %c0_i32_0 : i32, i32
  }
  func.func @transform_3(%arg0: i32) -> (i32, i32) {
    %c0_i32 = arith.constant 0 : i32
    %c0_i32_0 = arith.constant 0 : i32
    %c0_i32_1 = arith.constant 0 : i32
    return %c0_i32, %c0_i32_0 : i32, i32
  }
  func.func @transform_4(%arg0: i32) -> (i32, i32) {
    %c0_i32 = arith.constant 0 : i32
    %c0_i32_0 = arith.constant 0 : i32
    %c0_i32_1 = arith.constant 0 : i32
    return %c0_i32, %c0_i32_0 : i32, i32
  }
  func.func @transform_5(%arg0: i32) -> (i32, i32, i32, i32) {
    %c0_i32 = arith.constant 0 : i32
    %c0_i32_0 = arith.constant 0 : i32
    %c0_i32_1 = arith.constant 0 : i32
    %c0_i32_2 = arith.constant 0 : i32
    %c0_i32_3 = arith.constant 0 : i32
    return %c0_i32, %c0_i32_0, %c0_i32_1, %c0_i32_2 : i32, i32, i32, i32
  }
  func.func @transform_6(%arg0: i32) -> (i32, i32, i32) {
    %c0_i32 = arith.constant 0 : i32
    %c0_i32_0 = arith.constant 0 : i32
    %c0_i32_1 = arith.constant 0 : i32
    return %arg0, %c0_i32, %c0_i32_0 : i32, i32, i32
  }
  func.func @transform_7(%arg0: i32) -> (i32, i32, i32) {
    %c0_i32 = arith.constant 0 : i32
    %c0_i32_0 = arith.constant 0 : i32
    %c0_i32_1 = arith.constant 0 : i32
    return %arg0, %c0_i32, %c0_i32_0 : i32, i32, i32
  }
  func.func @transform_8(%arg0: i32) -> (i32, i32, i32) {
    %c0_i32 = arith.constant 0 : i32
    %c0_i32_0 = arith.constant 0 : i32
    %c0_i32_1 = arith.constant 0 : i32
    return %arg0, %c0_i32, %c0_i32_0 : i32, i32, i32
  }
}

module attributes {stable_mosaic.version = 11 : i64} {
  func.func @_bn_residual_kernel(%arg0: i32, %arg1: memref<4x8x256xf32, #tpu.memory_space<vmem>>, %arg2: memref<4x8x256xf32, #tpu.memory_space<vmem>>, %arg3: memref<8x1xf32, #tpu.memory_space<vmem>>, %arg4: memref<8x1xf32, #tpu.memory_space<vmem>>, %arg5: memref<4x8x256xf32, #tpu.memory_space<vmem>>) attributes {dimension_semantics = [#tpu.dimension_semantics<parallel>], iteration_bounds = array<i64: 2>, scalar_prefetch = 0 : i64, scratch_operands = 0 : i64, tpu.core_type = #tpu.core_type<tc>, window_params = [{transform_indices = @transform_0, window_bounds = array<i64: 4, 8, 256>}, {transform_indices = @transform_1, window_bounds = array<i64: 4, 8, 256>}, {pipeline_mode = #tpu.pipeline_mode<synchronous>, transform_indices = @transform_2, window_bounds = array<i64: 8, 1>}, {pipeline_mode = #tpu.pipeline_mode<synchronous>, transform_indices = @transform_3, window_bounds = array<i64: 8, 1>}, {transform_indices = @transform_4, window_bounds = array<i64: 4, 8, 256>}]} {
    %c0 = arith.constant 0 : index
    %c0_0 = arith.constant 0 : index
    %0 = vector.load %arg3[%c0, %c0_0] : memref<8x1xf32, #tpu.memory_space<vmem>>, vector<8x1xf32>
    %c0_1 = arith.constant 0 : index
    %c0_2 = arith.constant 0 : index
    %1 = vector.load %arg4[%c0_1, %c0_2] : memref<8x1xf32, #tpu.memory_space<vmem>>, vector<8x1xf32>
    %c0_3 = arith.constant 0 : index
    %c0_4 = arith.constant 0 : index
    %c0_5 = arith.constant 0 : index
    %2 = vector.load %arg2[%c0_3, %c0_4, %c0_5] : memref<4x8x256xf32, #tpu.memory_space<vmem>>, vector<1x8x256xf32>
    %3 = vector.shape_cast %2 : vector<1x8x256xf32> to vector<8x256xf32>
    %c0_6 = arith.constant 0 : index
    %c0_7 = arith.constant 0 : index
    %c0_8 = arith.constant 0 : index
    %4 = vector.load %arg1[%c0_6, %c0_7, %c0_8] : memref<4x8x256xf32, #tpu.memory_space<vmem>>, vector<1x8x256xf32>
    %5 = vector.shape_cast %4 : vector<1x8x256xf32> to vector<8x256xf32>
    %6 = vector.broadcast %0 : vector<8x1xf32> to vector<8x256xf32>
    %7 = arith.mulf %5, %6 : vector<8x256xf32>
    %8 = arith.addf %3, %7 : vector<8x256xf32>
    %9 = vector.broadcast %1 : vector<8x1xf32> to vector<8x256xf32>
    %10 = arith.addf %8, %9 : vector<8x256xf32>
    %c0_9 = arith.constant 0 : index
    %c0_10 = arith.constant 0 : index
    %c0_11 = arith.constant 0 : index
    %11 = vector.load %arg5[%c0_9, %c0_10, %c0_11] : memref<4x8x256xf32, #tpu.memory_space<vmem>>, vector<1x8x256xf32>
    %12 = vector.shape_cast %11 : vector<1x8x256xf32> to vector<8x256xf32>
    %13 = vector.shape_cast %10 : vector<8x256xf32> to vector<1x8x256xf32>
    tpu.vector_store %arg5[%c0_9, %c0_10, %c0_11], %13 {strides = array<i32>} : memref<4x8x256xf32, #tpu.memory_space<vmem>>, vector<1x8x256xf32>,
    %c1 = arith.constant 1 : index
    %c0_12 = arith.constant 0 : index
    %c0_13 = arith.constant 0 : index
    %14 = vector.load %arg2[%c1, %c0_12, %c0_13] : memref<4x8x256xf32, #tpu.memory_space<vmem>>, vector<1x8x256xf32>
    %15 = vector.shape_cast %14 : vector<1x8x256xf32> to vector<8x256xf32>
    %c1_14 = arith.constant 1 : index
    %c0_15 = arith.constant 0 : index
    %c0_16 = arith.constant 0 : index
    %16 = vector.load %arg1[%c1_14, %c0_15, %c0_16] : memref<4x8x256xf32, #tpu.memory_space<vmem>>, vector<1x8x256xf32>
    %17 = vector.shape_cast %16 : vector<1x8x256xf32> to vector<8x256xf32>
    %18 = vector.broadcast %0 : vector<8x1xf32> to vector<8x256xf32>
    %19 = arith.mulf %17, %18 : vector<8x256xf32>
    %20 = arith.addf %15, %19 : vector<8x256xf32>
    %21 = vector.broadcast %1 : vector<8x1xf32> to vector<8x256xf32>
    %22 = arith.addf %20, %21 : vector<8x256xf32>
    %c1_17 = arith.constant 1 : index
    %c0_18 = arith.constant 0 : index
    %c0_19 = arith.constant 0 : index
    %23 = vector.load %arg5[%c1_17, %c0_18, %c0_19] : memref<4x8x256xf32, #tpu.memory_space<vmem>>, vector<1x8x256xf32>
    %24 = vector.shape_cast %23 : vector<1x8x256xf32> to vector<8x256xf32>
    %25 = vector.shape_cast %22 : vector<8x256xf32> to vector<1x8x256xf32>
    tpu.vector_store %arg5[%c1_17, %c0_18, %c0_19], %25 {strides = array<i32>} : memref<4x8x256xf32, #tpu.memory_space<vmem>>, vector<1x8x256xf32>,
    %c2 = arith.constant 2 : index
    %c0_20 = arith.constant 0 : index
    %c0_21 = arith.constant 0 : index
    %26 = vector.load %arg2[%c2, %c0_20, %c0_21] : memref<4x8x256xf32, #tpu.memory_space<vmem>>, vector<1x8x256xf32>
    %27 = vector.shape_cast %26 : vector<1x8x256xf32> to vector<8x256xf32>
    %c2_22 = arith.constant 2 : index
    %c0_23 = arith.constant 0 : index
    %c0_24 = arith.constant 0 : index
    %28 = vector.load %arg1[%c2_22, %c0_23, %c0_24] : memref<4x8x256xf32, #tpu.memory_space<vmem>>, vector<1x8x256xf32>
    %29 = vector.shape_cast %28 : vector<1x8x256xf32> to vector<8x256xf32>
    %30 = vector.broadcast %0 : vector<8x1xf32> to vector<8x256xf32>
    %31 = arith.mulf %29, %30 : vector<8x256xf32>
    %32 = arith.addf %27, %31 : vector<8x256xf32>
    %33 = vector.broadcast %1 : vector<8x1xf32> to vector<8x256xf32>
    %34 = arith.addf %32, %33 : vector<8x256xf32>
    %c2_25 = arith.constant 2 : index
    %c0_26 = arith.constant 0 : index
    %c0_27 = arith.constant 0 : index
    %35 = vector.load %arg5[%c2_25, %c0_26, %c0_27] : memref<4x8x256xf32, #tpu.memory_space<vmem>>, vector<1x8x256xf32>
    %36 = vector.shape_cast %35 : vector<1x8x256xf32> to vector<8x256xf32>
    %37 = vector.shape_cast %34 : vector<8x256xf32> to vector<1x8x256xf32>
    tpu.vector_store %arg5[%c2_25, %c0_26, %c0_27], %37 {strides = array<i32>} : memref<4x8x256xf32, #tpu.memory_space<vmem>>, vector<1x8x256xf32>,
    %c3 = arith.constant 3 : index
    %c0_28 = arith.constant 0 : index
    %c0_29 = arith.constant 0 : index
    %38 = vector.load %arg2[%c3, %c0_28, %c0_29] : memref<4x8x256xf32, #tpu.memory_space<vmem>>, vector<1x8x256xf32>
    %39 = vector.shape_cast %38 : vector<1x8x256xf32> to vector<8x256xf32>
    %c3_30 = arith.constant 3 : index
    %c0_31 = arith.constant 0 : index
    %c0_32 = arith.constant 0 : index
    %40 = vector.load %arg1[%c3_30, %c0_31, %c0_32] : memref<4x8x256xf32, #tpu.memory_space<vmem>>, vector<1x8x256xf32>
    %41 = vector.shape_cast %40 : vector<1x8x256xf32> to vector<8x256xf32>
    %42 = vector.broadcast %0 : vector<8x1xf32> to vector<8x256xf32>
    %43 = arith.mulf %41, %42 : vector<8x256xf32>
    %44 = arith.addf %39, %43 : vector<8x256xf32>
    %45 = vector.broadcast %1 : vector<8x1xf32> to vector<8x256xf32>
    %46 = arith.addf %44, %45 : vector<8x256xf32>
    %c3_33 = arith.constant 3 : index
    %c0_34 = arith.constant 0 : index
    %c0_35 = arith.constant 0 : index
    %47 = vector.load %arg5[%c3_33, %c0_34, %c0_35] : memref<4x8x256xf32, #tpu.memory_space<vmem>>, vector<1x8x256xf32>
    %48 = vector.shape_cast %47 : vector<1x8x256xf32> to vector<8x256xf32>
    %49 = vector.shape_cast %46 : vector<8x256xf32> to vector<1x8x256xf32>
    tpu.vector_store %arg5[%c3_33, %c0_34, %c0_35], %49 {strides = array<i32>} : memref<4x8x256xf32, #tpu.memory_space<vmem>>, vector<1x8x256xf32>,
    return
  }
  func.func @transform_0(%arg0: i32) -> (i32, i32, i32) {
    %c0_i32 = arith.constant 0 : i32
    %c0_i32_0 = arith.constant 0 : i32
    %c0_i32_1 = arith.constant 0 : i32
    return %arg0, %c0_i32, %c0_i32_0 : i32, i32, i32
  }
  func.func @transform_1(%arg0: i32) -> (i32, i32, i32) {
    %c0_i32 = arith.constant 0 : i32
    %c0_i32_0 = arith.constant 0 : i32
    %c0_i32_1 = arith.constant 0 : i32
    return %arg0, %c0_i32, %c0_i32_0 : i32, i32, i32
  }
  func.func @transform_2(%arg0: i32) -> (i32, i32) {
    %c0_i32 = arith.constant 0 : i32
    %c0_i32_0 = arith.constant 0 : i32
    %c0_i32_1 = arith.constant 0 : i32
    return %c0_i32, %c0_i32_0 : i32, i32
  }
  func.func @transform_3(%arg0: i32) -> (i32, i32) {
    %c0_i32 = arith.constant 0 : i32
    %c0_i32_0 = arith.constant 0 : i32
    %c0_i32_1 = arith.constant 0 : i32
    return %c0_i32, %c0_i32_0 : i32, i32
  }
  func.func @transform_4(%arg0: i32) -> (i32, i32, i32) {
    %c0_i32 = arith.constant 0 : i32
    %c0_i32_0 = arith.constant 0 : i32
    %c0_i32_1 = arith.constant 0 : i32
    return %arg0, %c0_i32, %c0_i32_0 : i32, i32, i32
  }
}

</mosaic_0001>

<bundles_post_ra>
// kernel: msba_forward.3
= control target key start
LH: loop header
LB: loop body
LE: loop exit
PB: predicated region body
PF: predicated region fallthrough
CT: control target
= control target key end

     0   :  { %s451_s15 = smov 0   ;;  %s507_s0 = inlined_call_operand.vmem [shape: f32[8,8,256], index: 0, kind: input, shape index: {}, may-alias: {0,4}]   ;;  %s508_s1 = inlined_call_operand.vmem [shape: f32[8,8,256], index: 1, kind: input, shape index: {}]   ;;  %s509_s2 = inlined_call_operand.vmem [shape: f32[8,1], index: 2, kind: input, shape index: {}]   ;;  %s510_s3 = inlined_call_operand.vmem [shape: f32[8,1], index: 3, kind: input, shape index: {}]   ;;  %s511_s4 = inlined_call_operand.vmem [shape: f32[8,8,256], index: 4, kind: output, shape index: {}, may-alias: {0,4}]  }
   0x1 LB: > { %s370_s16 = sadd.s32 4294967295, %s423_s15   ;;  %p374_p0 = scmp.ge.s32.totalorder %s423_s15, 1  ;;  %s423_s15 = sphi %s451_s15, %s14_s15  }
   0x2   : > { %p176_p1 = scmp.lt.s32.totalorder %s423_s15, 3 }
   0x4   : > { %p177_p2 = pnand %p374_p0, %p176_p1 }
   0x5   : > { %s375_s21 = sshll.u32 (!%p177_p2), %s370_s16, 2 }
   0x6   : > { %180 = sbr.rel (%p177_p2) target bundleno = 186 (0xba), region = 36  ;;  %p211_p3 = scmp.lt.s32.totalorder (!%p177_p2), %s375_s21, 7 }
   0xb   : > { %v231_v0 = vld [vmem:[%s509_s2] sm:$0xff]  ;;  %v425_v1 = vmov 0   ;;  %s513_s21 = smov (!%p211_p3, %s375_s21), 7 }
   0xc   : > { %416 = vset.pattern.permute.xlu0 %v425_v1  ;;  %v232_v2 = vld [vmem:[%s510_s3] sm:$0xff]  ;;  %s404_s22 = sshll.u32 %s513_s21, 4 }
   0xd   : > { %239 = vperm.xlu0 %416, %v231_v0   ;;  %s468_s25 = scalar_lea.vmem %s507_s0, %s404_s22  ;;  %s473_s28 = scalar_lea.vmem %s508_s1, %s404_s22 }
   0xe   : > { %v235_v3 = vld [vmem:[%s468_s25] sm:$0xff]  ;;  %v236_v4 = vld [vmem:[%s468_s25 + $0x8] sm:$0xff]  ;;  %s482_s5 = scalar_lea.vmem %s511_s4, %s404_s22  ;;  %v384_v15 = vld [vmem:[%s473_s28 + $0x10] sm:$0xff] }
   0xf   : > { %v233_v6 = vld [vmem:[%s473_s28] sm:$0xff]  ;;  %v234_v7 = vld [vmem:[%s473_s28 + $0x8] sm:$0xff]  ;;  %v385_v16 = vld [vmem:[%s473_s28 + $0x18] sm:$0xff] }
  0x10   : > { %v390_v25 = vld [vmem:[%s473_s28 + $0x20] sm:$0xff]  ;;  %v391_v26 = vld [vmem:[%s473_s28 + $0x28] sm:$0xff]  ;;  %v396_v35 = vld [vmem:[%s473_s28 + $0x30] sm:$0xff] }
  0x11   : > { %248 = vperm.xlu0 %416, %v232_v2   ;;  %v397_v36 = vld [vmem:[%s473_s28 + $0x38] sm:$0xff] }
  0x88   : > { %v240_v5 = vpop.permute.xlu0 %239 }
  0x89   : > { %v242_v8 = vmul.f32 %v240_v5, %v235_v3  ;;  %v243_v9 = vmul.f32 %v240_v5, %v236_v4 }
  0x8b   : > { %v244_v10 = vadd.f32 %v242_v8, %v233_v6  ;;  %v245_v11 = vadd.f32 %v243_v9, %v234_v7 }
  0x8c   : > { %v249_v12 = vpop.permute.xlu0 %248 }
  0x8d   : > { %v251_v13 = vadd.f32 %v249_v12, %v244_v10  ;;  %v252_v14 = vadd.f32 %v249_v12, %v245_v11 }
  0x8f   : > { %253 = vst [vmem:[%s482_s5] sm:$0xff] %v251_v13  ;;  %254 = vst [vmem:[%s482_s5 + $0x8] sm:$0xff] %v252_v14 }
  0x96   : > { %v386_v17 = vld [vmem:[%s468_s25 + $0x10] sm:$0xff]  ;;  %v387_v18 = vld [vmem:[%s468_s25 + $0x18] sm:$0xff] }
  0x97   : > { %v261_v19 = vmul.f32 %v386_v17, %v240_v5  ;;  %v262_v20 = vmul.f32 %v387_v18, %v240_v5 }
  0x99   : > { %v263_v21 = vadd.f32 %v384_v15, %v261_v19  ;;  %v264_v22 = vadd.f32 %v385_v16, %v262_v20 }
  0x9b   : > { %v265_v23 = vadd.f32 %v263_v21, %v249_v12  ;;  %v266_v24 = vadd.f32 %v264_v22, %v249_v12 }
  0x9d   : > { %388 = vst [vmem:[%s482_s5 + $0x10] sm:$0xff] %v265_v23  ;;  %389 = vst [vmem:[%s482_s5 + $0x18] sm:$0xff] %v266_v24 }
  0xa4   : > { %v392_v27 = vld [vmem:[%s468_s25 + $0x20] sm:$0xff]  ;;  %v393_v28 = vld [vmem:[%s468_s25 + $0x28] sm:$0xff] }
  0xa5   : > { %v276_v29 = vmul.f32 %v392_v27, %v240_v5  ;;  %v277_v30 = vmul.f32 %v393_v28, %v240_v5 }
  0xa7   : > { %v278_v31 = vadd.f32 %v390_v25, %v276_v29  ;;  %v279_v32 = vadd.f32 %v391_v26, %v277_v30 }
  0xa9   : > { %v280_v33 = vadd.f32 %v278_v31, %v249_v12  ;;  %v281_v34 = vadd.f32 %v279_v32, %v249_v12 }
  0xab   : > { %394 = vst [vmem:[%s482_s5 + $0x20] sm:$0xff] %v280_v33  ;;  %395 = vst [vmem:[%s482_s5 + $0x28] sm:$0xff] %v281_v34 }
  0xb2   : > { %v398_v37 = vld [vmem:[%s468_s25 + $0x30] sm:$0xff]  ;;  %v399_v38 = vld [vmem:[%s468_s25 + $0x38] sm:$0xff] }
  0xb3   : > { %v291_v39 = vmul.f32 %v398_v37, %v240_v5  ;;  %v292_v40 = vmul.f32 %v399_v38, %v240_v5 }
  0xb5   : > { %v293_v41 = vadd.f32 %v396_v35, %v291_v39  ;;  %v294_v42 = vadd.f32 %v397_v36, %v292_v40 }
  0xb7   : > { %v295_v43 = vadd.f32 %v293_v41, %v249_v12  ;;  %v296_v44 = vadd.f32 %v294_v42, %v249_v12 }
  0xb9   : > { %400 = vst [vmem:[%s482_s5 + $0x30] sm:$0xff] %v295_v43  ;;  %401 = vst [vmem:[%s482_s5 + $0x38] sm:$0xff] %v296_v44 }
  0xba PF: > { %s14_s15 = sadd.s32 1, %s423_s15  }
  0xbb   : > { %p11_p4 = scmp.ge.s32.totalorder %s14_s15, 4  }
  0xbd   :  { %13 = sbr.rel (!%p11_p4) target bundleno = 1 (0x1), region = 78 }

// kernel: msba_forward.2
= control target key start
LH: loop header
LB: loop body
LE: loop exit
PB: predicated region body
PF: predicated region fallthrough
CT: control target
= control target key end

     0   :  { %s1783_s27 = smov 0   ;;  %s2098_s0 = inlined_call_operand.vmem [shape: f32[8,8,256], index: 0, kind: input, shape index: {}]   ;;  %s2099_s1 = inlined_call_operand.vmem [shape: f32[12,8], index: 1, kind: input, shape index: {}]   ;;  %s2100_s2 = inlined_call_operand.vmem [shape: f32[12,1], index: 2, kind: input, shape index: {}]   ;;  %s2101_s3 = inlined_call_operand.vmem [shape: f32[8,4], index: 3, kind: input, shape index: {}]   ;;  %s2102_s4 = inlined_call_operand.vmem [shape: f32[8,1], index: 4, kind: input, shape index: {}]   ;;  %s2103_s5 = inlined_call_operand.vmem [shape: f32[4,4,4,1], index: 5, kind: input, shape index: {}]   ;;  %s2104_s6 = inlined_call_operand.vmem [shape: f32[8,8,256], index: 6, kind: output, shape index: {0}]   ;;  %s2105_s7 = inlined_call_operand.vmem [shape: f32[2,8,1], index: 7, kind: output, shape index: {1}]   ;;  %s2106_s8 = inlined_call_operand.vmem [shape: f32[2,8,1], index: 8, kind: output, shape index: {2}]  }
   0x1 LB: > { %s1789_s28 = sadd.s32 4294967295, %s1734_s27   ;;  %p1616_p0 = scmp.ge.s32.totalorder %s1734_s27, 1  ;;  %s1734_s27 = sphi %s1783_s27, %s19_s27  }
   0x2   : > { %p269_p1 = scmp.lt.s32.totalorder %s1734_s27, 3 }
   0x4   : > { %p270_p2 = pnand %p1616_p0, %p269_p1 }
   0x5   : > { %s1617_s29 = sshll.u32 (!%p270_p2), %s1789_s28, 2  ;;  %p327_p4 = scmp.lt.s32.totalorder (!%p270_p2), %s1789_s28, 1 }
   0x6   : > { %273 = sbr.rel (%p270_p2) target bundleno = 947 (0x3b3), region = 44  ;;  %p314_p3 = scmp.lt.s32.totalorder (!%p270_p2), %s1617_s29, 7 }
   0xb   : > { %v1736_v0 = vmov 0.0   ;;  %v337_v1 = vld [vmem:[%s2100_s2] sm:$0xff]  ;;  %v1737_v2 = vmov 0   ;;  %s2108_s29 = smov (!%p314_p3, %s1617_s29), 7  ;;  %vm353_vm0 = vcmask 64512   ;;  %vm697_vm1 = vcmask 1043456  }
   0xc   : > { %424 = vmatprep.mubr.f32.mxu0 %v1736_v0  ;;  %504 = vmatprep.mubr.f32.mxu1 %v1736_v0  ;;  %s1674_s10 = sshll.u32 %s2108_s29, 4  ;;  %v335_v3 = vld [vmem:[%s2099_s1] sm:$0xff]  ;;  %v336_v11 = vld [vmem:[%s2099_s1 + $0x8] sm:$0xf]  ;;  %vm820_vm2 = vcmask 31744   ;;  %s2110_s28 = smov (!%p327_p4, %s1789_s28), 1 }
   0xd   : > { %1686 = vset.pattern.permute.xlu0 %v1737_v2  ;;  %1687 = vset.pattern.permute.xlu1 %v1737_v2  ;;  %s318_s13 = scalar_lea.vmem %s2098_s0, %s1674_s10  ;;  %s2077_s22 = scalar_lea.vmem %s2104_s6, %s1674_s10  ;;  %vm1489_vm3 = vcmask 7168  }
   0xe   : > { %345 = vperm.xlu0 %1686, %v337_v1   ;;  %v342_v4 = vld [vmem:[%s318_s13 + $0x8] sm:$0xff]  ;;  %v1628_v5 = vld [vmem:[%s318_s13 + $0x18] sm:$0xff]  ;;  %v341_v6 = vld [vmem:[%s318_s13] sm:$0xff]  ;;  %s1623_s29 = sshll.u32 %s2110_s28, 3 }
   0xf   : > { %390 = vmatprep.subr.mxu0 %v342_v4  ;;  %470 = vmatprep.subr.mxu1 %v1628_v5  ;;  %v1627_v7 = vld [vmem:[%s318_s13 + $0x10] sm:$0xff]  ;;  %v1636_v8 = vld [vmem:[%s318_s13 + $0x38] sm:$0xff]  ;;  %v1632_v10 = vld [vmem:[%s318_s13 + $0x28] sm:$0xff]  ;;  %s330_s24 = scalar_lea.vmem %s2105_s7, %s1623_s29  ;;  %s334_s30 = scalar_lea.vmem %s2106_s8, %s1623_s29 }
  0x10   : > { %391 = vmatpush1.msra.mxu0 %v341_v6  ;;  %471 = vmatpush1.msra.mxu1 %v1627_v7  ;;  %v1635_v9 = vld [vmem:[%s318_s13 + $0x30] sm:$0xff]  ;;  %v1631_v12 = vld [vmem:[%s318_s13 + $0x20] sm:$0xff] }
  0x11   : > { %1625 = vmatmul.mubr.msk.f32.vlgmr.msra.gmra.mxu0 %vm353_vm0, %v335_v3  ;;  %1629 = vmatmul.mubr.msk.f32.vlgmr.msra.gmra.mxu1 %vm353_vm0, %v335_v3 }
  0x12   : > { %630 = vmatprep.subr.mxu1 %v1636_v8  ;;  %430 = vmatprep.mubr.f32.mxu0 %v1736_v0 }
  0x13   : > { %510 = vmatprep.mubr.f32.mxu1 %v1736_v0  ;;  %631 = vmatpush1.msra.mxu1 %v1635_v9 }
  0x14   : > { %550 = vmatprep.subr.mxu0 %v1632_v10 }
  0x15   : > { %1626 = vmatmul.mubr.msk.f32.gmra.mxu0 %vm353_vm0, %v336_v11  ;;  %1630 = vmatmul.mubr.msk.f32.gmra.mxu1 %vm353_vm0, %v336_v11 }
  0x16   : > { %551 = vmatpush1.msra.mxu0 %v1631_v12  ;;  %584 = vmatprep.mubr.f32.mxu0 %v1736_v0 }
  0x17   : > { %664 = vmatprep.mubr.f32.mxu1 %v1736_v0 }
  0x19   : > { %1633 = vmatmul.mubr.msk.f32.vlgmr.msra.gmra.mxu0 %vm353_vm0, %v335_v3  ;;  %1637 = vmatmul.mubr.msk.f32.vlgmr.msra.gmra.mxu1 %vm353_vm0, %v335_v3 }
  0x1a   : > { %590 = vmatprep.mubr.f32.mxu0 %v1736_v0  ;;  %670 = vmatprep.mubr.f32.mxu1 %v1736_v0 }
  0x1d   : > { %1634 = vmatmul.mubr.msk.f32.gmra.mxu0 %vm353_vm0, %v336_v11  ;;  %1638 = vmatmul.mubr.msk.f32.gmra.mxu1 %vm353_vm0, %v336_v11 }
  0x1e   : > { %894 = vmatprep.mubr.f32.mxu0 %v1736_v0  ;;  %1085 = vmatprep.mubr.f32.mxu1 %v1736_v0 }
  0x89   : > { %v346_v13 = vpop.permute.xlu0 %345 }
  0xd1   : > { %v426_v14 = vpop.f32.mrf.mxu0  ;;  %v506_v15 = vpop.f32.mrf.mxu1 }
  0xd2   : > { %v427_v16 = vadd.f32 %v426_v14, %v346_v13  ;;  %v507_v17 = vadd.f32 %v506_v15, %v346_v13 }
  0xd3   : > { %v428_v18 = vpop.f32.mrf.mxu0  ;;  %v508_v19 = vpop.f32.mrf.mxu1 }
  0xd4   : > { %v677_v20 = vmul.f32 2.0, %v427_v16  ;;  %v429_v21 = vadd.f32 %v428_v18, %v346_v13  ;;  %v509_v22 = vadd.f32 %v508_v19, %v346_v13  ;;  %v1835_v26 = vrot.slane %v507_v17, 4 }
  0xd5   : > { %v1829_v23 = vpop.f32.mrf.mxu0  ;;  %v1831_v24 = vpop.f32.mrf.mxu1  ;;  %v1841_v30 = vrot.slane %v427_v16, 4  ;;  %v681_v40 = vmul.f32 2.0, %v507_v17 }
  0xd6   : > { %v1833_v25 = vsub.f32 %v677_v20, %v507_v17  ;;  %v678_v27 = vmul.f32 2.0, %v429_v21  ;;  %v1845_v32 = vrot.slane %v429_v21, 4  ;;  %v1849_v34 = vrot.slane %v509_v22, 4 }
  0xd7   : > { %v1837_v28 = vpop.f32.mrf.mxu0  ;;  %v1839_v29 = vpop.f32.mrf.mxu1  ;;  %v682_v41 = vmul.f32 2.0, %v509_v22 }
  0xd8   : > { %v712_v31 = vmul.f32 %v1835_v26, %v1833_v25  ;;  %v1847_v33 = vsub.f32 %v678_v27, %v509_v22  ;;  %v695_v39 = vmul.f32 %v1841_v30, %v1833_v25 }
  0xd9   : > { %v586_v35 = vpop.f32.mrf.mxu0  ;;  %v666_v36 = vpop.f32.mrf.mxu1 }
  0xda   : > { %v587_v37 = vadd.f32 %v586_v35, %v346_v13  ;;  %v1851_v38 = vadd.f32 %v666_v36, %v346_v13  ;;  %v713_v44 = vmul.f32 %v1849_v34, %v1847_v33  ;;  %v696_v45 = vmul.f32 %v1845_v32, %v1847_v33 }
  0xdb   : > { %v588_v42 = vpop.f32.mrf.mxu0  ;;  %v668_v43 = vpop.f32.mrf.mxu1  ;;  %v714_v49 = vsel %vm697_vm1, %v712_v31, 0.0  ;;  %v698_v57 = vsel %vm697_vm1, %v695_v39, 0.0 }
  0xdc   : > { %v685_v46 = vmul.f32 2.0, %v587_v37  ;;  %v1859_v47 = vrot.slane %v587_v37, 4  ;;  %v589_v48 = vadd.f32 %v588_v42, %v346_v13  ;;  %v1862_v50 = vadd.f32 %v668_v43, %v346_v13 }
  0xdd   : > { %v715_v51 = vsel %vm697_vm1, %v713_v44, 0.0  ;;  %v699_v52 = vsel %vm697_vm1, %v696_v45, 0.0  ;;  %v1297_v53 = vmul.f32 %v1841_v30, %v1851_v38  ;;  %v683_v58 = vsub.f32 %v681_v40, %v587_v37 }
  0xde   : > { %v686_v54 = vmul.f32 2.0, %v589_v48  ;;  %v726_v55 = vrot.slane %v589_v48, 4  ;;  %v716_v56 = vadd.f32 %v715_v51, %v714_v49  ;;  %v700_v59 = vadd.f32 %v699_v52, %v698_v57 }
  0xdf   : > { %v1298_v60 = vmul.f32 %v1845_v32, %v1862_v50  ;;  %v1308_v61 = vmul.f32 %v1835_v26, %v1851_v38  ;;  %v684_v62 = vsub.f32 %v682_v41, %v589_v48  ;;  %v1309_v63 = vmul.f32 %v1849_v34, %v1862_v50 }
  0xe0   : > { %717 = vadd.xlane.f32.xlu1 %v716_v56  ;;  %v730_v1 = vmul.f32 %v726_v55, %v1847_v33  ;;  %v1877_v2 = vsub.f32 %v685_v46, %v1851_v38  ;;  %701 = vadd.xlane.f32.xlu0 %v700_v59  ;;  %v1299_v3 = vsel %vm697_vm1, %v1297_v53, 0.0  ;;  %v729_v5 = vmul.f32 %v1859_v47, %v1833_v25 }
  0xe1   : > { %v1300_v4 = vsel %vm697_vm1, %v1298_v60, 0.0  ;;  %v1884_v6 = vsub.f32 %v686_v54, %v1862_v50  ;;  %v1310_v8 = vsel %vm697_vm1, %v1308_v61, 0.0  ;;  %v1311_v9 = vsel %vm697_vm1, %v1309_v63, 0.0 }
  0xe2   : > { %v1301_v7 = vadd.f32 %v1300_v4, %v1299_v3  ;;  %v1312_v10 = vadd.f32 %v1311_v9, %v1310_v8  ;;  %v732_v11 = vsel %vm697_vm1, %v730_v1, 0.0  ;;  %v1127_v12 = vmul.f32 %v1859_v47, %v1877_v2 }
  0xe3   : > { %v1128_v13 = vmul.f32 %v726_v55, %v1884_v6  ;;  %v914_v14 = vmul.f32 %v1845_v32, %v684_v62  ;;  %v1320_v15 = vmul.f32 %v726_v55, %v1862_v50  ;;  %v731_v16 = vsel %vm697_vm1, %v729_v5, 0.0 }
  0xe4   : > { %1302 = vadd.xlane.f32.xlu1 %v1301_v7  ;;  %1313 = vadd.xlane.f32.xlu0 %v1312_v10  ;;  %v1129_v17 = vsel %vm697_vm1, %v1127_v12, 0.0  ;;  %v913_v19 = vmul.f32 %v1841_v30, %v683_v58  ;;  %v733_v20 = vadd.f32 %v732_v11, %v731_v16  ;;  %v1319_v22 = vmul.f32 %v1859_v47, %v1851_v38 }
  0xe5   : > { %v1130_v18 = vsel %vm697_vm1, %v1128_v13, 0.0  ;;  %v916_v27 = vsel %vm697_vm1, %v914_v14, 0.0  ;;  %v925_v31 = vmul.f32 %v1849_v34, %v684_v62  ;;  %v1322_v35 = vsel %vm697_vm1, %v1320_v15, 0.0 }
  0xe6   : > { %v1131_v21 = vadd.f32 %v1130_v18, %v1129_v17  ;;  %v743_v36 = vrot.slane %v1862_v50, 4  ;;  %v915_v37 = vsel %vm697_vm1, %v913_v19, 0.0  ;;  %v924_v39 = vmul.f32 %v1835_v26, %v683_v58 }
  0xe7   : > { %v742_v40 = vrot.slane %v1851_v38, 4  ;;  %v917_v41 = vadd.f32 %v916_v27, %v915_v37  ;;  %v1321_v42 = vsel %vm697_vm1, %v1319_v22, 0.0  ;;  %v927_v44 = vsel %vm697_vm1, %v925_v31, 0.0  ;;  %v1640_v27 = vld [vmem:[%s2103_s5 + $0x8] sm:$0xf] }
  0xe8   : > { %734 = vadd.xlane.f32.xlu1 %v733_v20  ;;  %1132 = vadd.xlane.f32.xlu0 %v1131_v21  ;;  %v1323_v43 = vadd.f32 %v1322_v35, %v1321_v42  ;;  %v747_v45 = vmul.f32 %v743_v36, %v1847_v33  ;;  %v926_v46 = vsel %vm697_vm1, %v924_v39, 0.0  ;;  %v936_v52 = vmul.f32 %v726_v55, %v684_v62  ;;  %v1639_v21 = vld [vmem:[%s2103_s5 + $0x4] sm:$0xf]  ;;  %v1641_v39 = vld [vmem:[%s2103_s5 + $0xc] sm:$0xf] }
  0xe9   : > { %v746_v48 = vmul.f32 %v742_v40, %v1833_v25  ;;  %v928_v49 = vadd.f32 %v927_v44, %v926_v46  ;;  %v935_v54 = vmul.f32 %v1859_v47, %v683_v58  ;;  %v947_v59 = vmul.f32 %v743_v36, %v684_v62 }
  0xea   : > { %v749_v51 = vsel %vm697_vm1, %v747_v45, 0.0  ;;  %v938_v57 = vsel %vm697_vm1, %v936_v52, 0.0  ;;  %v946_v60 = vmul.f32 %v742_v40, %v683_v58  ;;  %v1106_v63 = vmul.f32 %v1845_v32, %v1884_v6 }
  0xeb   : > { %v748_v53 = vsel %vm697_vm1, %v746_v48, 0.0  ;;  %v937_v33 = vsel %vm697_vm1, %v935_v54, 0.0  ;;  %v949_v25 = vsel %vm697_vm1, %v947_v59, 0.0  ;;  %v1105_v47 = vmul.f32 %v1841_v30, %v1877_v2  ;;  %v338_v30 = vld [vmem:[%s2100_s2 + $0x8] sm:$0xf] }
  0xec   : > { %918 = vadd.xlane.f32.xlu1 %v917_v41  ;;  %1324 = vadd.xlane.f32.xlu0 %v1323_v43  ;;  %v750_v56 = vadd.f32 %v749_v51, %v748_v53  ;;  %v939_v61 = vadd.f32 %v938_v57, %v937_v33  ;;  %v948_v55 = vsel %vm697_vm1, %v946_v60, 0.0  ;;  %v1108_v3 = vsel %vm697_vm1, %v1106_v63, 0.0  ;;  %v1646_v51 = vld [vmem:[%s2103_s5 + $0x14] sm:$0xf]  ;;  %v1647_v63 = vld [vmem:[%s2103_s5 + $0x18] sm:$0xf] }
  0xed   : > { %v950_v1 = vadd.f32 %v949_v25, %v948_v55  ;;  %v1117_v62 = vmul.f32 %v1849_v34, %v1884_v6  ;;  %v1107_v58 = vsel %vm697_vm1, %v1105_v47, 0.0  ;;  %v1116_v4 = vmul.f32 %v1835_v26, %v1877_v2 }
  0xee   : > { %v1109_v5 = vadd.f32 %v1108_v3, %v1107_v58  ;;  %v1139_v7 = vmul.f32 %v743_v36, %v1884_v6  ;;  %v1138_v34 = vmul.f32 %v742_v40, %v1877_v2  ;;  %v1331_v26 = vmul.f32 %v743_v36, %v1862_v50 }
  0xef   : > { %v1119_v32 = vsel %vm697_vm1, %v1117_v62, 0.0  ;;  %v1118_v8 = vsel %vm697_vm1, %v1116_v4, 0.0  ;;  %v1330_v6 = vmul.f32 %v742_v40, %v1851_v38  ;;  %v704_v38 = vld [vmem:[%s2103_s5] sm:$0xf]  ;;  %v1648_v62 = vld [vmem:[%s2103_s5 + $0x1c] sm:$0xf] }
  0xf0   : > { %929 = vadd.xlane.f32.xlu1 %v928_v49  ;;  %v1120_v9 = vadd.f32 %v1119_v32, %v1118_v8  ;;  %v1141_v10 = vsel %vm697_vm1, %v1139_v7, 0.0  ;;  %v1140_v11 = vsel %vm697_vm1, %v1138_v34, 0.0  ;;  %v1333_v13 = vsel %vm697_vm1, %v1331_v26, 0.0 }
  0xf1   : > { %v1142_v12 = vadd.f32 %v1141_v10, %v1140_v11  ;;  %v1332_v14 = vsel %vm697_vm1, %v1330_v6, 0.0  ;;  %v1655_v10 = vld [vmem:[%s2103_s5 + $0x24] sm:$0xf] }
  0xf2   : > { %v1334_v15 = vadd.f32 %v1333_v13, %v1332_v14 }
  0xf4   : > { %751 = vadd.xlane.f32.xlu1 %v750_v56  ;;  %v1645_v56 = vld [vmem:[%s2103_s5 + $0x10] sm:$0xf] }
  0xf8   : > { %940 = vadd.xlane.f32.xlu1 %v939_v61 }
  0xfc   : > { %951 = vadd.xlane.f32.xlu1 %v950_v1 }
 0x100   : > { %1110 = vadd.xlane.f32.xlu1 %v1109_v5 }
 0x102   : > { %350 = vperm.xlu0 %1686, %v338_v30  }
 0x104   : > { %1121 = vadd.xlane.f32.xlu1 %v1120_v9  ;;  %v1654_v9 = vld [vmem:[%s2103_s5 + $0x20] sm:$0xf] }
 0x108   : > { %1143 = vadd.xlane.f32.xlu1 %v1142_v12 }
 0x10c   : > { %1335 = vadd.xlane.f32.xlu1 %v1334_v15  ;;  %v1656_v15 = vld [vmem:[%s2103_s5 + $0x28] sm:$0xf] }
 0x169   : > { %v718_v2 = vpop.xlane.xlu1 %717  ;;  %v702_v18 = vpop.xlane.xlu0 %701 }
 0x16a   : > { %v719_v20 = vmul.f32 16.0, %v718_v2  ;;  %v703_v50 = vmul.f32 16.0, %v702_v18  ;;  %v1664_v18 = vld [vmem:[%s2103_s5 + $0x34] sm:$0xf] }
 0x16c   : > { %v722_v35 = vadd.f32 %v1639_v21, %v719_v20  ;;  %v705_v36 = vadd.f32 %v704_v38, %v703_v50 }
 0x16d   : > { %v1303_v16 = vpop.xlane.xlu1 %1302  ;;  %v1314_v46 = vpop.xlane.xlu0 %1313 }
 0x16e   : > { %v757_v41 = vmax.f32 %v705_v36, %v722_v35  ;;  %v1304_v13 = vmul.f32 16.0, %v1303_v16  ;;  %v1315_v14 = vmul.f32 16.0, %v1314_v46  ;;  %v1657_v16 = vld [vmem:[%s2103_s5 + $0x2c] sm:$0xf] }
 0x171   : > { %v735_v17 = vpop.xlane.xlu1 %734  ;;  %v1133_v3 = vpop.xlane.xlu0 %1132 }
 0x172   : > { %v736_v22 = vmul.f32 16.0, %v735_v17  ;;  %v1134_v11 = vmul.f32 16.0, %v1133_v3  ;;  %v1663_v17 = vld [vmem:[%s2103_s5 + $0x30] sm:$0xf] }
 0x174   : > { %v739_v37 = vadd.f32 %v1640_v27, %v736_v22  ;;  %v1137_v38 = vadd.f32 %v1656_v15, %v1134_v11  ;;  %v1665_v22 = vld [vmem:[%s2103_s5 + $0x38] sm:$0xf] }
 0x175   : > { %v919_v19 = vpop.xlane.xlu1 %918  ;;  %v1325_v6 = vpop.xlane.xlu0 %1324 }
 0x176   : > { %v758_v43 = vmax.f32 %v757_v41, %v739_v37  ;;  %v920_v57 = vmul.f32 16.0, %v919_v19  ;;  %v1326_v50 = vmul.f32 16.0, %v1325_v6 }
 0x178   : > { %v923_v58 = vadd.f32 %v1645_v56, %v920_v57 }
 0x179   : > { %v930_v31 = vpop.xlane.xlu1 %929 }
 0x17a   : > { %v931_v49 = vmul.f32 16.0, %v930_v31 }
 0x17c   : > { %v934_v55 = vadd.f32 %v1646_v51, %v931_v49  ;;  %v1666_v49 = vld [vmem:[%s2103_s5 + $0x3c] sm:$0xf] }
 0x17d   : > { %v752_v40 = vpop.xlane.xlu1 %751 }
 0x17e   : > { %v753_v42 = vmul.f32 16.0, %v752_v40  ;;  %v957_v7 = vmax.f32 %v923_v58, %v934_v55 }
 0x180   : > { %v756_v44 = vadd.f32 %v1641_v39, %v753_v42 }
 0x181   : > { %v941_v45 = vpop.xlane.xlu1 %940 }
 0x182   : > { %v759_v48 = vmax.f32 %v758_v43, %v756_v44  ;;  %v942_v33 = vmul.f32 16.0, %v941_v45  ;;  %v1329_v43 = vadd.f32 %v1665_v22, %v1326_v50 }
 0x184   : > { %v760_v52 = vsub.f32 %v705_v36, %v759_v48  ;;  %v763_v53 = vsub.f32 %v722_v35, %v759_v48  ;;  %v766_v54 = vsub.f32 %v739_v37, %v759_v48  ;;  %v769_v59 = vsub.f32 %v756_v44, %v759_v48 }
 0x185   : > { %v952_v60 = vpop.xlane.xlu1 %951  ;;  %v945_v5 = vadd.f32 %v1647_v63, %v942_v33  ;;  %v1307_v35 = vadd.f32 %v1663_v17, %v1304_v13  ;;  %v1318_v36 = vadd.f32 %v1664_v18, %v1315_v14 }
 0x186   : > { %v761_v61 = vmul.f32 1.442695, %v760_v52  ;;  %v764_v25 = vmul.f32 1.442695, %v763_v53  ;;  %v767_v47 = vmul.f32 1.442695, %v766_v54 }
 0x187   : > { %v953_v1 = vmul.f32 16.0, %v952_v60  ;;  %v770_v4 = vmul.f32 1.442695, %v769_v59  ;;  %v958_v34 = vmax.f32 %v957_v7, %v945_v5  ;;  %v1341_v52 = vmax.f32 %v1307_v35, %v1318_v36 }
 0x188   : > { %1688 = vpow2.f32 %v761_v61 }
 0x189   : > { %1690 = vpow2.f32 %v764_v25  ;;  %v1111_v32 = vpop.xlane.xlu1 %1110  ;;  %v1966_v30 = vadd.f32 %v1648_v62, %v953_v1  ;;  %v1342_v33 = vmax.f32 %v1341_v52, %v1329_v43 }
 0x18a   : > { %1692 = vpow2.f32 %v767_v47  ;;  %v1112_v8 = vmul.f32 16.0, %v1111_v32 }
 0x18b   : > { %1694 = vpow2.f32 %v770_v4  ;;  %v959_v2 = vmax.f32 %v958_v34, %v1966_v30 }
 0x18c   : > { %v1115_v19 = vadd.f32 %v1654_v9, %v1112_v8 }
 0x18d   : > { %v1122_v26 = vpop.xlane.xlu1 %1121  ;;  %v960_v37 = vsub.f32 %v923_v58, %v959_v2  ;;  %v963_v39 = vsub.f32 %v934_v55, %v959_v2  ;;  %v966_v46 = vsub.f32 %v945_v5, %v959_v2  ;;  %v969_v3 = vsub.f32 %v1966_v30, %v959_v2 }
 0x18e   : > { %v1123_v12 = vmul.f32 16.0, %v1122_v26 }
 0x18f   : > { %v961_v54 = vmul.f32 1.442695, %v960_v37  ;;  %v964_v57 = vmul.f32 1.442695, %v963_v39  ;;  %v967_v63 = vmul.f32 1.442695, %v966_v46 }
 0x190   : > { %v1126_v20 = vadd.f32 %v1655_v10, %v1123_v12  ;;  %v970_v10 = vmul.f32 1.442695, %v969_v3  ;;  %v672_v3 = vpop.f32.mrf.mxu1 }
 0x191   : > { %v1144_v21 = vpop.xlane.xlu1 %1143  ;;  %1696 = vpow2.f32 %v961_v54 }
 0x192   : > { %v1149_v27 = vmax.f32 %v1115_v19, %v1126_v20  ;;  %v1145_v31 = vmul.f32 16.0, %v1144_v21  ;;  %1698 = vpow2.f32 %v964_v57 }
 0x194   : > { %v1148_v40 = vadd.f32 %v1657_v16, %v1145_v31  ;;  %v1150_v41 = vmax.f32 %v1149_v27, %v1137_v38 }
 0x195   : > { %v1689_v42 = vpop.eup %1688  ;;  %v1336_v44 = vpop.xlane.xlu1 %1335 }
 0x196   : > { %v1691_v45 = vpop.eup %1690  ;;  %v1151_v48 = vmax.f32 %v1150_v41, %v1148_v40  ;;  %v1337_v51 = vmul.f32 16.0, %v1336_v44 }
 0x197   : > { %v772_v53 = vadd.f32 %v1691_v45, %v1689_v42  ;;  %v1693_v56 = vpop.eup %1692 }
 0x198   : > { %v1152_v59 = vsub.f32 %v1115_v19, %v1151_v48  ;;  %v1340_v61 = vadd.f32 %v1666_v49, %v1337_v51  ;;  %v1695_v25 = vpop.eup %1694  ;;  %v1155_v47 = vsub.f32 %v1126_v20, %v1151_v48  ;;  %v1158_v26 = vsub.f32 %v1137_v38, %v1151_v48 }
 0x199   : > { %v773_v60 = vadd.f32 %v1693_v56, %v772_v53  ;;  %v1161_v6 = vsub.f32 %v1148_v40, %v1151_v48 }
 0x19a   : > { %v1343_v1 = vmax.f32 %v1342_v33, %v1340_v61  ;;  %v1153_v62 = vmul.f32 1.442695, %v1152_v59  ;;  %v1156_v7 = vmul.f32 1.442695, %v1155_v47  ;;  %v1159_v30 = vmul.f32 1.442695, %v1158_v26 }
 0x19b   : > { %v774_v55 = vadd.f32 %v1695_v25, %v773_v60  ;;  %v1162_v15 = vmul.f32 1.442695, %v1161_v6  ;;  %v340_v47 = vld [vmem:[%s2102_s4] sm:$0xff] }
 0x19c   : > { %v1344_v58 = vsub.f32 %v1307_v35, %v1343_v1  ;;  %v1347_v4 = vsub.f32 %v1318_v36, %v1343_v1  ;;  %v1350_v5 = vsub.f32 %v1329_v43, %v1343_v1  ;;  %v1353_v32 = vsub.f32 %v1340_v61, %v1343_v1  ;;  %v592_v1 = vpop.f32.mrf.mxu0 }
 0x19d   : > { %1700 = vrcp.f32 %v774_v55 }
 0x19e   : > { %1702 = vpow2.f32 %v967_v63  ;;  %v1345_v8 = vmul.f32 1.442695, %v1344_v58  ;;  %v1348_v34 = vmul.f32 1.442695, %v1347_v4  ;;  %v1351_v9 = vmul.f32 1.442695, %v1350_v5  ;;  %v1697_v12 = vpop.eup %1696  ;;  %v594_v4 = vpop.f32.mrf.mxu0 }
 0x19f   : > { %1704 = vpow2.f32 %v1153_v62  ;;  %v1354_v11 = vmul.f32 1.442695, %v1353_v32  ;;  %v1699_v13 = vpop.eup %1698  ;;  %v351_v62 = vpop.permute.xlu0 %350 }
 0x1a0   : > { %1706 = vpow2.f32 %v1345_v8  ;;  %v972_v19 = vadd.f32 %v1699_v13, %v1697_v12  ;;  %v674_v5 = vpop.f32.mrf.mxu1  ;;  %v1998_v32 = vadd.f32 %v1829_v23, %v351_v62  ;;  %v2004_v8 = vadd.f32 %v1831_v24, %v351_v62 }
 0x1a1   : > { %1708 = vpow2.f32 %v1348_v34  ;;  %v2007_v34 = vadd.f32 %v1839_v29, %v351_v62  ;;  %v2019_v24 = vadd.f32 %v674_v5, %v351_v62 }
 0x1a2   : > { %1710 = vpow2.f32 %v1156_v7  ;;  %v2001_v7 = vadd.f32 %v1837_v28, %v351_v62 }
 0x1a3   : > { %1712 = vpow2.f32 %v1351_v9  ;;  %v2009_v9 = vadd.f32 %v592_v1, %v351_v62 }
 0x1a4   : > { %1714 = vpow2.f32 %v970_v10  ;;  %v2011_v10 = vadd.f32 %v594_v4, %v351_v62 }
 0x1a5   : > { %1716 = vpow2.f32 %v1354_v11 }
 0x1a6   : > { %1718 = vpow2.f32 %v1159_v30 }
 0x1a7   : > { %1720 = vpow2.f32 %v1162_v15 }
 0x1aa   : > { %v1701_v14 = vpop.eup %1700 }
 0x1ab   : > { %v795_v2 = vmul.f32 %v1701_v14, %v1693_v56  ;;  %v777_v17 = vmul.f32 %v1701_v14, %v1689_v42  ;;  %v1703_v18 = vpop.eup %1702  ;;  %v785_v21 = vmul.f32 %v1701_v14, %v1691_v45  ;;  %v805_v39 = vmul.f32 %v1701_v14, %v1695_v25 }
 0x1ac   : > { %v1705_v20 = vpop.eup %1704  ;;  %v973_v22 = vadd.f32 %v1703_v18, %v972_v19 }
 0x1ad   : > { %798 = vperm.xlu0 %1686, %v795_v2   ;;  %780 = vperm.xlu1 %1687, %v777_v17   ;;  %v1707_v50 = vpop.eup %1706 }
 0x1ae   : > { %v1709_v16 = vpop.eup %1708 }
 0x1af   : > { %v1711_v38 = vpop.eup %1710  ;;  %v1356_v27 = vadd.f32 %v1709_v16, %v1707_v50 }
 0x1b0   : > { %v1713_v31 = vpop.eup %1712  ;;  %v1164_v41 = vadd.f32 %v1711_v38, %v1705_v20 }
 0x1b1   : > { %788 = vperm.xlu1 %1687, %v785_v21   ;;  %v1715_v35 = vpop.eup %1714  ;;  %v1357_v36 = vadd.f32 %v1713_v31, %v1356_v27  ;;  %v2028_v21 = vld [vmem:[%s2101_s3] sm:$0xff] }
 0x1b2   : > { %v1717_v37 = vpop.eup %1716  ;;  %v974_v40 = vadd.f32 %v1715_v35, %v973_v22 }
 0x1b3   : > { %v1358_v42 = vadd.f32 %v1717_v37, %v1357_v36  ;;  %v1719_v43 = vpop.eup %1718 }
 0x1b4   : > { %v1165_v44 = vadd.f32 %v1719_v43, %v1164_v41  ;;  %v1721_v46 = vpop.eup %1720 }
 0x1b5   : > { %808 = vperm.xlu1 %1687, %v805_v39   ;;  %1722 = vrcp.f32 %v1358_v42 }
 0x1b6   : > { %1724 = vrcp.f32 %v974_v40  ;;  %v1166_v48 = vadd.f32 %v1721_v46, %v1165_v44 }
 0x1b8   : > { %1726 = vrcp.f32 %v1166_v48 }
 0x1c2   : > { %v1723_v45 = vpop.eup %1722 }
 0x1c3   : > { %v1369_v49 = vmul.f32 %v1723_v45, %v1709_v16  ;;  %v1361_v51 = vmul.f32 %v1723_v45, %v1707_v50  ;;  %v1725_v52 = vpop.eup %1724  ;;  %v1379_v63 = vmul.f32 %v1723_v45, %v1713_v31  ;;  %v1389_v55 = vmul.f32 %v1723_v45, %v1717_v37 }
 0x1c4   : > { %v985_v53 = vmul.f32 %v1725_v52, %v1699_v13  ;;  %v977_v54 = vmul.f32 %v1725_v52, %v1697_v12  ;;  %v995_v56 = vmul.f32 %v1725_v52, %v1703_v18  ;;  %v1005_v57 = vmul.f32 %v1725_v52, %v1715_v35 }
 0x1c5   : > { %1372 = vperm.xlu0 %1686, %v1369_v49   ;;  %1364 = vperm.xlu1 %1687, %v1361_v51   ;;  %v1727_v59 = vpop.eup %1726  ;;  %v2017_v12 = vadd.f32 %v672_v3, %v351_v62 }
 0x1c6   : > { %v1177_v33 = vmul.f32 %v1727_v59, %v1711_v38  ;;  %v1169_v60 = vmul.f32 %v1727_v59, %v1705_v20  ;;  %v1187_v61 = vmul.f32 %v1727_v59, %v1719_v43  ;;  %v1197_v25 = vmul.f32 %v1727_v59, %v1721_v46 }
 0x1c9   : > { %988 = vperm.xlu0 %1686, %v985_v53   ;;  %980 = vperm.xlu1 %1687, %v977_v54  }
 0x1cd   : > { %998 = vperm.xlu0 %1686, %v995_v56   ;;  %1008 = vperm.xlu1 %1687, %v1005_v57  }
 0x1d1   : > { %1180 = vperm.xlu0 %1686, %v1177_v33   ;;  %1172 = vperm.xlu1 %1687, %v1169_v60  }
 0x1d5   : > { %1190 = vperm.xlu0 %1686, %v1187_v61   ;;  %1200 = vperm.xlu1 %1687, %v1197_v25  }
 0x1d9   : > { %1382 = vperm.xlu0 %1686, %v1379_v63   ;;  %1392 = vperm.xlu1 %1687, %v1389_v55  }
 0x1dd   : > { %817 = vperm.xlu0 %1686, %v340_v47  }
 0x228   : > { %v781_v58 = vpop.permute.xlu1 %780  ;;  %v799_v26 = vpop.permute.xlu0 %798 }
 0x229   : > { %v783_v30 = vmul.f32 %v781_v58, %v1998_v32  ;;  %v784_v23 = vmul.f32 %v781_v58, %v2001_v7  ;;  %v801_v29 = vmul.f32 %v799_v26, %v2009_v9  ;;  %v802_v13 = vmul.f32 %v799_v26, %v2011_v10 }
 0x22c   : > { %v789_v11 = vpop.permute.xlu1 %788 }
 0x22d   : > { %v791_v6 = vmul.f32 %v789_v11, %v2004_v8  ;;  %v792_v28 = vmul.f32 %v789_v11, %v2007_v34 }
 0x22f   : > { %v793_v14 = vadd.f32 %v791_v6, %v783_v30  ;;  %v794_v15 = vadd.f32 %v792_v28, %v784_v23 }
 0x230   : > { %v809_v2 = vpop.permute.xlu1 %808 }
 0x231   : > { %v803_v17 = vadd.f32 %v801_v29, %v793_v14  ;;  %v804_v18 = vadd.f32 %v802_v13, %v794_v15  ;;  %v811_v19 = vmul.f32 %v809_v2, %v2017_v12  ;;  %v812_v20 = vmul.f32 %v809_v2, %v2019_v24 }
 0x233   : > { %v813_v50 = vadd.f32 %v811_v19, %v803_v17  ;;  %v814_v16 = vadd.f32 %v812_v20, %v804_v18 }
 0x235   : > { %1642 = vmatprep.subr.msk.mxu0 %vm697_vm1, %v814_v16 }
 0x236   : > { %1643 = vmatpush1.msk.msra.mxu0 %vm697_vm1, %v813_v50 }
 0x237   : > { %1644 = vmatmul.mubr.msk.f32.vlgmr.msra.gmra.mxu0 %vm820_vm2, %v2028_v21 }
 0x238   : > { %1277 = vmatprep.mubr.f32.mxu0 %v1736_v0 }
 0x240   : > { %v1365_v38 = vpop.permute.xlu1 %1364  ;;  %v1373_v22 = vpop.permute.xlu0 %1372 }
 0x241   : > { %v1367_v3 = vmul.f32 %v1365_v38, %v1998_v32  ;;  %v1368_v62 = vmul.f32 %v1365_v38, %v2001_v7  ;;  %v1375_v58 = vmul.f32 %v1373_v22, %v2004_v8  ;;  %v1376_v4 = vmul.f32 %v1373_v22, %v2007_v34 }
 0x243   : > { %v1377_v13 = vadd.f32 %v1375_v58, %v1367_v3 }
 0x244   : > { %v981_v27 = vpop.permute.xlu1 %980  ;;  %v989_v31 = vpop.permute.xlu0 %988 }
 0x245   : > { %v983_v35 = vmul.f32 %v981_v27, %v1998_v32  ;;  %v984_v36 = vmul.f32 %v981_v27, %v2001_v7  ;;  %v991_v37 = vmul.f32 %v989_v31, %v2004_v8  ;;  %v992_v39 = vmul.f32 %v989_v31, %v2007_v34 }
 0x247   : > { %v993_v42 = vadd.f32 %v991_v37, %v983_v35  ;;  %v994_v43 = vadd.f32 %v992_v39, %v984_v36 }
 0x248   : > { %v1009_v40 = vpop.permute.xlu1 %1008  ;;  %v999_v41 = vpop.permute.xlu0 %998 }
 0x249   : > { %v1001_v44 = vmul.f32 %v999_v41, %v2009_v9  ;;  %v1002_v46 = vmul.f32 %v999_v41, %v2011_v10  ;;  %v1011_v48 = vmul.f32 %v1009_v40, %v2017_v12  ;;  %v1012_v45 = vmul.f32 %v1009_v40, %v2019_v24 }
 0x24b   : > { %v1003_v49 = vadd.f32 %v1001_v44, %v993_v42  ;;  %v1004_v51 = vadd.f32 %v1002_v46, %v994_v43 }
 0x24c   : > { %v1173_v52 = vpop.permute.xlu1 %1172  ;;  %v1181_v53 = vpop.permute.xlu0 %1180 }
 0x24d   : > { %v1013_v54 = vadd.f32 %v1011_v48, %v1003_v49  ;;  %v1014_v56 = vadd.f32 %v1012_v45, %v1004_v51  ;;  %v1175_v57 = vmul.f32 %v1173_v52, %v1998_v32  ;;  %v1176_v59 = vmul.f32 %v1173_v52, %v2001_v7 }
 0x24e   : > { %v1183_v33 = vmul.f32 %v1181_v53, %v2004_v8  ;;  %v1184_v60 = vmul.f32 %v1181_v53, %v2007_v34  ;;  %v1378_v32 = vadd.f32 %v1376_v4, %v1368_v62 }
 0x24f   : > { %1649 = vmatprep.subr.msk.mxu1 %vm697_vm1, %v1014_v56 }
 0x250   : > { %v1201_v61 = vpop.permute.xlu1 %1200  ;;  %1650 = vmatpush1.msk.msra.mxu1 %vm697_vm1, %v1013_v54  ;;  %v1191_v25 = vpop.permute.xlu0 %1190  ;;  %v1185_v63 = vadd.f32 %v1183_v33, %v1175_v57  ;;  %v1186_v55 = vadd.f32 %v1184_v60, %v1176_v59 }
 0x251   : > { %v1193_v47 = vmul.f32 %v1191_v25, %v2009_v9  ;;  %v1194_v1 = vmul.f32 %v1191_v25, %v2011_v10  ;;  %1651 = vmatmul.mubr.msk.f32.vlgmr.msra.gmra.mxu1 %vm820_vm2, %v2028_v21  ;;  %v1203_v5 = vmul.f32 %v1201_v61, %v2017_v12  ;;  %v1204_v26 = vmul.f32 %v1201_v61, %v2019_v24 }
 0x252   : > { %1469 = vmatprep.mubr.f32.mxu1 %v1736_v0 }
 0x253   : > { %v1195_v11 = vadd.f32 %v1193_v47, %v1185_v63  ;;  %v1196_v30 = vadd.f32 %v1194_v1, %v1186_v55 }
 0x254   : > { %v1383_v23 = vpop.permute.xlu0 %1382  ;;  %v1393_v29 = vpop.permute.xlu1 %1392 }
 0x255   : > { %v1205_v6 = vadd.f32 %v1203_v5, %v1195_v11  ;;  %v1206_v28 = vadd.f32 %v1204_v26, %v1196_v30  ;;  %v1385_v7 = vmul.f32 %v1383_v23, %v2009_v9  ;;  %v1386_v8 = vmul.f32 %v1383_v23, %v2011_v10 }
 0x256   : > { %v1395_v0 = vmul.f32 %v1393_v29, %v2017_v12  ;;  %v1396_v34 = vmul.f32 %v1393_v29, %v2019_v24 }
 0x257   : > { %1658 = vmatprep.subr.msk.mxu0 %vm697_vm1, %v1206_v28  ;;  %v1387_v14 = vadd.f32 %v1385_v7, %v1377_v13  ;;  %v1388_v15 = vadd.f32 %v1386_v8, %v1378_v32 }
 0x258   : > { %1659 = vmatpush1.msk.msra.mxu0 %vm697_vm1, %v1205_v6  ;;  %v818_v9 = vpop.permute.xlu0 %817 }
 0x259   : > { %1660 = vmatmul.mubr.msk.f32.vlgmr.msra.gmra.mxu0 %vm820_vm2, %v2028_v21  ;;  %v1397_v2 = vadd.f32 %v1395_v0, %v1387_v14  ;;  %v1398_v17 = vadd.f32 %v1396_v34, %v1388_v15 }
 0x25b   : > { %1667 = vmatprep.subr.msk.mxu1 %vm697_vm1, %v1398_v17 }
 0x25c   : > { %1668 = vmatpush1.msk.msra.mxu1 %vm697_vm1, %v1397_v2 }
 0x25d   : > { %1669 = vmatmul.mubr.msk.f32.vlgmr.msra.gmra.mxu1 %vm820_vm2, %v2028_v21 }
 0x2f7   : > { %v896_v10 = vpop.f32.mrf.mxu0 }
 0x2f8   : > { %v897_v12 = vadd.f32 %v896_v10, %v818_v9 }
 0x2f9   : > { %v898_v24 = vpop.f32.mrf.mxu0 }
 0x2fa   : > { %901 = vst [vmem:[%s2077_s22] sm:$0xff] %v897_v12  ;;  %v899_v18 = vadd.f32 %v898_v24, %v818_v9  ;;  %v907_v20 = vmul.f32 %v897_v12, %v897_v12 }
 0x2fc   : > { %902 = vst [vmem:[%s2077_s22 + $0x8] sm:$0xff] %v899_v18  ;;  %v903_v19 = vadd.f32 %v899_v18, %v897_v12  ;;  %v908_v50 = vmul.f32 %v899_v18, %v899_v18 }
 0x2fe   : > { %904 = vadd.xlane.f32.xlu1 %v903_v19  ;;  %v909_v16 = vadd.f32 %v908_v50, %v907_v20 }
 0x300   : > { %910 = vadd.xlane.f32.xlu0 %v909_v16 }
 0x311   : > { %v1087_v21 = vpop.f32.mrf.mxu1 }
 0x312   : > { %v1088_v38 = vadd.f32 %v1087_v21, %v818_v9 }
 0x313   : > { %v1089_v22 = vpop.f32.mrf.mxu1 }
 0x314   : > { %1652 = vst [vmem:[%s2077_s22 + $0x10] sm:$0xff] %v1088_v38  ;;  %v1090_v27 = vadd.f32 %v1089_v22, %v818_v9  ;;  %v1099_v35 = vmul.f32 %v1088_v38, %v1088_v38 }
 0x316   : > { %1653 = vst [vmem:[%s2077_s22 + $0x18] sm:$0xff] %v1090_v27  ;;  %v1095_v31 = vadd.f32 %v1090_v27, %v1088_v38  ;;  %v1100_v36 = vmul.f32 %v1090_v27, %v1090_v27 }
 0x318   : > { %1096 = vadd.xlane.f32.xlu0 %v1095_v31  ;;  %v1101_v37 = vadd.f32 %v1100_v36, %v1099_v35 }
 0x319   : > { %v1279_v39 = vpop.f32.mrf.mxu0 }
 0x31a   : > { %v1280_v40 = vadd.f32 %v1279_v39, %v818_v9  ;;  %1102 = vadd.xlane.f32.xlu1 %v1101_v37 }
 0x31b   : > { %v1281_v41 = vpop.f32.mrf.mxu0 }
 0x31c   : > { %1661 = vst [vmem:[%s2077_s22 + $0x20] sm:$0xff] %v1280_v40  ;;  %v1282_v42 = vadd.f32 %v1281_v41, %v818_v9  ;;  %v1291_v46 = vmul.f32 %v1280_v40, %v1280_v40 }
 0x31d   : > { %v1471_v43 = vpop.f32.mrf.mxu1 }
 0x31e   : > { %1662 = vst [vmem:[%s2077_s22 + $0x28] sm:$0xff] %v1282_v42  ;;  %v1287_v44 = vadd.f32 %v1282_v42, %v1280_v40  ;;  %v1292_v48 = vmul.f32 %v1282_v42, %v1282_v42  ;;  %v1472_v45 = vadd.f32 %v1471_v43, %v818_v9 }
 0x31f   : > { %v1473_v49 = vpop.f32.mrf.mxu1 }
 0x320   : > { %1288 = vadd.xlane.f32.xlu0 %v1287_v44  ;;  %v1293_v51 = vadd.f32 %v1292_v48, %v1291_v46  ;;  %1670 = vst [vmem:[%s2077_s22 + $0x30] sm:$0xff] %v1472_v45  ;;  %v1474_v52 = vadd.f32 %v1473_v49, %v818_v9  ;;  %v1483_v54 = vmul.f32 %v1472_v45, %v1472_v45 }
 0x322   : > { %1294 = vadd.xlane.f32.xlu1 %v1293_v51  ;;  %1671 = vst [vmem:[%s2077_s22 + $0x38] sm:$0xff] %v1474_v52  ;;  %v1479_v53 = vadd.f32 %v1474_v52, %v1472_v45  ;;  %v1484_v56 = vmul.f32 %v1474_v52, %v1474_v52 }
 0x324   : > { %1480 = vadd.xlane.f32.xlu0 %v1479_v53  ;;  %v1485_v57 = vadd.f32 %v1484_v56, %v1483_v54 }
 0x326   : > { %1486 = vadd.xlane.f32.xlu1 %v1485_v57 }
 0x387   : > { %v905_v33 = vpop.xlane.xlu1 %904 }
 0x389   : > { %v911_v59 = vpop.xlane.xlu0 %910 }
 0x3a1   : > { %v1097_v60 = vpop.xlane.xlu0 %1096 }
 0x3a2   : > { %v1098_v63 = vadd.f32 %v1097_v60, %v905_v33 }
 0x3a3   : > { %v1103_v61 = vpop.xlane.xlu1 %1102 }
 0x3a4   : > { %v1104_v47 = vadd.f32 %v1103_v61, %v911_v59 }
 0x3a9   : > { %v1289_v25 = vpop.xlane.xlu0 %1288 }
 0x3aa   : > { %v1290_v1 = vadd.f32 %v1289_v25, %v1098_v63 }
 0x3ab   : > { %v1295_v55 = vpop.xlane.xlu1 %1294 }
 0x3ac   : > { %v1296_v62 = vadd.f32 %v1295_v55, %v1104_v47 }
 0x3ad   : > { %v1481_v3 = vpop.xlane.xlu0 %1480 }
 0x3ae   : > { %v1482_v58 = vadd.f32 %v1481_v3, %v1290_v1 }
 0x3af   : > { %v1487_v4 = vpop.xlane.xlu1 %1486 }
 0x3b0   : > { %1490 = vst.msk [vmem:[%s330_s24] sm:$0xff] %vm1489_vm3, %v1482_v58  ;;  %v1488_v5 = vadd.f32 %v1487_v4, %v1296_v62 }
 0x3b2   : > { %1491 = vst.msk [vmem:[%s334_s30] sm:$0xff] %vm1489_vm3, %v1488_v5 }
 0x3b3 PF: > { %s19_s27 = sadd.s32 1, %s1734_s27  }
 0x3b4   : > { %p16_p5 = scmp.ge.s32.totalorder %s19_s27, 4  }
 0x3b6   :  { %18 = sbr.rel (!%p16_p5) target bundleno = 1 (0x1), region = 119 }

</bundles_post_ra>
